<compile_context>
chip_gen: v7x
topology: tpu7x:2x2x1
jax: 0.10.0
libtpu: 0.0.40
codegen_flags: <defaults>
</compile_context>

<pallas_src>
import jax
import jax.numpy as jnp
from jax.experimental import pallas as pl
from jax.experimental.pallas import tpu as pltpu


# ---------------------------------------------------------------------------
# Fused kernel: multi-layer LSTM recurrence + attention pooling + fc.
# ---------------------------------------------------------------------------
def _make_fused_kernel(T, B, D_in, H, C, num_layers):
    def kernel(*refs):
        x_ref = refs[0]                                    # (T*B, D_in) time-major rows
        w_refs = refs[1:1 + 3 * num_layers]                # per layer: W_ih, W_hh, bias
        w_att_ref = refs[1 + 3 * num_layers]               # (1, H)
        b_att_ref = refs[2 + 3 * num_layers]               # (1, 1) in SMEM
        w_fc_ref = refs[3 + 3 * num_layers]                # (H, C)
        b_fc_ref = refs[4 + 3 * num_layers]                # (1, C)
        logits_ref = refs[5 + 3 * num_layers]              # (B, C) output
        seq_scr = refs[6 + 3 * num_layers]                 # (T*B, H) VMEM scratch

        b_att = b_att_ref[0, 0]                            # scalar from SMEM

        last_hs = []                                       # top-layer hidden per step
        for l in range(num_layers):                        # static unroll over layers
            w_ih = w_refs[3 * l][...]                      # (in_dim, 4H), gate order (i,f,o,g)
            w_hh = w_refs[3 * l + 1][...]                  # (H, 4H)
            bias = w_refs[3 * l + 2][...]                  # (1, 4H) = b_ih + b_hh

            inp = x_ref[...] if l == 0 else seq_scr[...]   # (T*B, in_dim)
            # Hoisted, time-parallel input projection (one MXU matmul per layer).
            gx = jnp.dot(inp, w_ih, preferred_element_type=jnp.float32) + bias  # (T*B, 4H)

            h = jnp.zeros((B, H), jnp.float32)
            c = jnp.zeros((B, H), jnp.float32)
            for t in range(T):                             # static unroll over time (T small)
                gates = gx[t * B:(t + 1) * B, :] + jnp.dot(
                    h, w_hh, preferred_element_type=jnp.float32)     # (B, 4H)
                # one sigmoid over (i,f,o) lanes, one tanh over g lanes
                sig = jax.nn.sigmoid(gates[:, :3 * H])
                i_g = sig[:, 0:H]
                f_g = sig[:, H:2 * H]
                o_g = sig[:, 2 * H:3 * H]
                g_g = jnp.tanh(gates[:, 3 * H:4 * H])

                c = f_g * c + i_g * g_g
                h = o_g * jnp.tanh(c)

                if l == num_layers - 1:
                    last_hs.append(h)                      # keep top-layer outputs live
                else:
                    seq_scr[t * B:(t + 1) * B, :] = h      # feed next layer's projection

        # ----- fused attention pooling (softmax over time) + fc epilogue -----
        w_att = w_att_ref[...]                             # (1, H)
        scores = []
        for t in range(T):
            s_t = jnp.sum(last_hs[t] * w_att, axis=-1, keepdims=True) + b_att   # (B, 1)
            scores.append(s_t)

        m = scores[0]
        for t in range(1, T):
            m = jnp.maximum(m, scores[t])

        denom = jnp.zeros((B, 1), jnp.float32)
        weighted = jnp.zeros((B, H), jnp.float32)
        for t in range(T):
            e_t = jnp.exp(scores[t] - m)
            denom = denom + e_t
            weighted = weighted + e_t * last_hs[t]
        weighted = weighted / denom                        # (B, H)

        logits_ref[...] = (jnp.dot(weighted, w_fc_ref[...],
                                   preferred_element_type=jnp.float32)
                           + b_fc_ref[...])                # (B, C)

    return kernel


def _reorder_gates(w, H):
    """Permute last-dim gate blocks from PyTorch order (i,f,g,o) to (i,f,o,g)."""
    return jnp.concatenate([w[..., :2 * H], w[..., 3 * H:4 * H], w[..., 2 * H:3 * H]],
                           axis=-1)


# ---------------------------------------------------------------------------
# Wrapper
# ---------------------------------------------------------------------------
def lstm_attention_classifier(x, params, *, hidden_size, num_layers, num_classes):
    B, D_in, T = x.shape
    H = hidden_size

    # PyTorch layout (B, D_in, T) -> time-major (T, B, D_in) -> flat (T*B, D_in).
    x2d = jnp.transpose(x, (2, 0, 1)).reshape(T * B, D_in).astype(jnp.float32)

    vmem = pltpu.MemorySpace.VMEM
    smem = pltpu.MemorySpace.SMEM

    flat_w = []
    in_specs = [pl.BlockSpec(memory_space=vmem)]           # x2d
    for l in range(num_layers):
        w_ih = _reorder_gates(params[f"w_ih_{l}"], H)
        w_hh = _reorder_gates(params[f"w_hh_{l}"], H)
        bias = _reorder_gates(params[f"b_ih_{l}"] + params[f"b_hh_{l}"], H)
        flat_w += [w_ih, w_hh, bias]
        in_specs += [pl.BlockSpec(memory_space=vmem)] * 3

    in_specs += [
        pl.BlockSpec(memory_space=vmem),                   # w_att (1, H)
        pl.BlockSpec(memory_space=smem),                   # b_att scalar (1, 1)
        pl.BlockSpec(memory_space=vmem),                   # w_fc (H, C)
        pl.BlockSpec(memory_space=vmem),                   # b_fc (1, C)
    ]

    logits = pl.pallas_call(
        _make_fused_kernel(T, B, D_in, H, num_classes, num_layers),
        out_shape=jax.ShapeDtypeStruct((B, num_classes), jnp.float32),
        in_specs=in_specs,
        out_specs=pl.BlockSpec(memory_space=vmem),
        scratch_shapes=[pltpu.VMEM((T * B, H), jnp.float32)],
    )(x2d, *flat_w, params["w_att"], params["b_att"], params["w_fc"], params["b_fc"])

    return logits


# ---------------------------------------------------------------------------
# Deterministic parameter init (PyTorch-style U(-1/sqrt(H), 1/sqrt(H))),
# stored in nn.LSTM gate order (i, f, g, o) across the 4H columns.
# ---------------------------------------------------------------------------
def init_params(key, input_size, hidden_size, num_layers, num_classes):
    H = hidden_size
    k = 1.0 / float(H) ** 0.5
    keys = jax.random.split(key, 4 * num_layers + 4)
    params = {}
    idx = 0
    for l in range(num_layers):
        in_dim = input_size if l == 0 else H
        params[f"w_ih_{l}"] = jax.random.uniform(keys[idx], (in_dim, 4 * H), jnp.float32, -k, k); idx += 1
        params[f"w_hh_{l}"] = jax.random.uniform(keys[idx], (H, 4 * H), jnp.float32, -k, k); idx += 1
        params[f"b_ih_{l}"] = jax.random.uniform(keys[idx], (1, 4 * H), jnp.float32, -k, k); idx += 1
        params[f"b_hh_{l}"] = jax.random.uniform(keys[idx], (1, 4 * H), jnp.float32, -k, k); idx += 1
    params["w_att"] = jax.random.uniform(keys[idx], (1, H), jnp.float32, -k, k); idx += 1
    params["b_att"] = jax.random.uniform(keys[idx], (1, 1), jnp.float32, -k, k); idx += 1
    params["w_fc"] = jax.random.uniform(keys[idx], (H, num_classes), jnp.float32, -k, k); idx += 1
    params["b_fc"] = jax.random.uniform(keys[idx], (1, num_classes), jnp.float32, -k, k); idx += 1
    return params


# ---------------------------------------------------------------------------
# Pure-JAX reference (same math, no Pallas) for a correctness check.
# ---------------------------------------------------------------------------
def reference(x, params, *, hidden_size, num_layers):
    H = hidden_size
    x_tbd = jnp.transpose(x, (2, 0, 1)).astype(jnp.float32)
    T, B, _ = x_tbd.shape
    layer_in = x_tbd
    for l in range(num_layers):
        wih, whh = params[f"w_ih_{l}"], params[f"w_hh_{l}"]
        bih, bhh = params[f"b_ih_{l}"], params[f"b_hh_{l}"]
        h = jnp.zeros((B, H), jnp.float32)
        c = jnp.zeros((B, H), jnp.float32)
        outs = []
        for t in range(T):
            gates = layer_in[t] @ wih + h @ whh + bih + bhh
            i = jax.nn.sigmoid(gates[:, :H])
            f = jax.nn.sigmoid(gates[:, H:2 * H])
            g = jnp.tanh(gates[:, 2 * H:3 * H])
            o = jax.nn.sigmoid(gates[:, 3 * H:4 * H])
            c = f * c + i * g
            h = o * jnp.tanh(c)
            outs.append(h)
        layer_in = jnp.stack(outs, axis=0)
    out = layer_in                                        # (T, B, H)
    scores = jnp.sum(out * params["w_att"][None], axis=-1) + params["b_att"][0, 0]
    alpha = jax.nn.softmax(scores, axis=0)
    weighted = jnp.sum(alpha[:, :, None] * out, axis=0)
    return weighted @ params["w_fc"] + params["b_fc"]


if __name__ == "__main__":
    B, INPUT_SIZE, SEQ_LEN = 2, 4, 8
    HIDDEN, NUM_LAYERS, NUM_CLASSES = 32, 2, 5

    root = jax.random.PRNGKey(0)
    kx, kp = jax.random.split(root)
    x = jax.random.normal(kx, (B, INPUT_SIZE, SEQ_LEN), jnp.float32)  # PyTorch (N, C, L)
    params = init_params(kp, INPUT_SIZE, HIDDEN, NUM_LAYERS, NUM_CLASSES)

    logits = lstm_attention_classifier(
        x, params, hidden_size=HIDDEN, num_layers=NUM_LAYERS, num_classes=NUM_CLASSES)
    logits = jax.block_until_ready(logits)

    ref = reference(x, params, hidden_size=HIDDEN, num_layers=NUM_LAYERS)
    assert logits.shape == (B, NUM_CLASSES)
    assert jnp.allclose(logits, ref, atol=1e-4, rtol=1e-4), (logits, ref)

    print("KERNEL_OK")
</pallas_src>

<mosaic_0001>
module attributes {stable_mosaic.version = 11 : i64} {
  func.func @kernel(%arg0: memref<16x4xf32, #tpu.memory_space<vmem>>, %arg1: memref<4x128xf32, #tpu.memory_space<vmem>>, %arg2: memref<32x128xf32, #tpu.memory_space<vmem>>, %arg3: memref<1x128xf32, #tpu.memory_space<vmem>>, %arg4: memref<32x128xf32, #tpu.memory_space<vmem>>, %arg5: memref<32x128xf32, #tpu.memory_space<vmem>>, %arg6: memref<1x128xf32, #tpu.memory_space<vmem>>, %arg7: memref<1x32xf32, #tpu.memory_space<vmem>>, %arg8: memref<1x1xf32, #tpu.memory_space<smem>>, %arg9: memref<32x5xf32, #tpu.memory_space<vmem>>, %arg10: memref<1x5xf32, #tpu.memory_space<vmem>>, %arg11: memref<2x5xf32, #tpu.memory_space<vmem>>, %arg12: memref<16x32xf32, #tpu.memory_space<vmem>>) attributes {dimension_semantics = [], scalar_prefetch = 0 : i64, scratch_operands = 1 : i64, tpu.core_type = #tpu.core_type<tc>} {
    %c0 = arith.constant 0 : index
    %c0_0 = arith.constant 0 : index
    %0 = memref.load %arg8[%c0, %c0_0] : memref<1x1xf32, #tpu.memory_space<smem>>
    %c0_1 = arith.constant 0 : index
    %c0_2 = arith.constant 0 : index
    %1 = vector.load %arg1[%c0_1, %c0_2] : memref<4x128xf32, #tpu.memory_space<vmem>>, vector<4x128xf32>
    %c0_3 = arith.constant 0 : index
    %c0_4 = arith.constant 0 : index
    %2 = vector.load %arg2[%c0_3, %c0_4] : memref<32x128xf32, #tpu.memory_space<vmem>>, vector<32x128xf32>
    %c0_5 = arith.constant 0 : index
    %c0_6 = arith.constant 0 : index
    %3 = vector.load %arg3[%c0_5, %c0_6] : memref<1x128xf32, #tpu.memory_space<vmem>>, vector<1x128xf32>
    %c0_7 = arith.constant 0 : index
    %c0_8 = arith.constant 0 : index
    %4 = vector.load %arg0[%c0_7, %c0_8] : memref<16x4xf32, #tpu.memory_space<vmem>>, vector<16x4xf32>
    %cst = arith.constant dense<0.000000e+00> : vector<16x128xf32>
    %5 = tpu.matmul %4, %1, %cst {dimension_numbers = #tpu.dot_dimension_numbers<[1], [0], [0], [1], [0, 0, 1, 1], [], []>} : vector<16x4xf32>, vector<4x128xf32>, vector<16x128xf32> -> vector<16x128xf32>
    %6 = vector.broadcast %3 : vector<1x128xf32> to vector<16x128xf32>
    %7 = arith.addf %5, %6 : vector<16x128xf32>
    %cst_9 = arith.constant 0.000000e+00 : f32
    %8 = vector.broadcast %cst_9 : f32 to vector<2x32xf32>
    %cst_10 = arith.constant 0.000000e+00 : f32
    %9 = vector.broadcast %cst_10 : f32 to vector<2x32xf32>
    %10 = vector.extract_strided_slice %7 {offsets = [0, 0], sizes = [2, 128], strides = [1, 1]} : vector<16x128xf32> to vector<2x128xf32>
    %cst_11 = arith.constant dense<0.000000e+00> : vector<2x128xf32>
    %11 = tpu.matmul %8, %2, %cst_11 {dimension_numbers = #tpu.dot_dimension_numbers<[1], [0], [0], [1], [0, 0, 1, 1], [], []>} : vector<2x32xf32>, vector<32x128xf32>, vector<2x128xf32> -> vector<2x128xf32>
    %12 = arith.addf %10, %11 : vector<2x128xf32>
    %13 = vector.extract_strided_slice %12 {offsets = [0, 0], sizes = [2, 96], strides = [1, 1]} : vector<2x128xf32> to vector<2x96xf32>
    %14 = arith.negf %13 : vector<2x96xf32>
    %15 = math.exp %14 : vector<2x96xf32>
    %cst_12 = arith.constant 1.000000e+00 : f32
    %16 = vector.broadcast %cst_12 : f32 to vector<2x96xf32>
    %17 = arith.addf %16, %15 : vector<2x96xf32>
    %18 = arith.divf %16, %17 : vector<2x96xf32>
    %19 = vector.extract_strided_slice %18 {offsets = [0, 0], sizes = [2, 32], strides = [1, 1]} : vector<2x96xf32> to vector<2x32xf32>
    %20 = vector.extract_strided_slice %18 {offsets = [0, 32], sizes = [2, 32], strides = [1, 1]} : vector<2x96xf32> to vector<2x32xf32>
    %21 = vector.extract_strided_slice %18 {offsets = [0, 64], sizes = [2, 32], strides = [1, 1]} : vector<2x96xf32> to vector<2x32xf32>
    %22 = vector.extract_strided_slice %12 {offsets = [0, 96], sizes = [2, 32], strides = [1, 1]} : vector<2x128xf32> to vector<2x32xf32>
    %23 = math.tanh %22 : vector<2x32xf32>
    %24 = arith.mulf %20, %9 : vector<2x32xf32>
    %25 = arith.mulf %19, %23 : vector<2x32xf32>
    %26 = arith.addf %24, %25 : vector<2x32xf32>
    %27 = math.tanh %26 : vector<2x32xf32>
    %28 = arith.mulf %21, %27 : vector<2x32xf32>
    %c0_13 = arith.constant 0 : index
    %c0_14 = arith.constant 0 : index
    %29 = vector.load %arg12[%c0_13, %c0_14] : memref<16x32xf32, #tpu.memory_space<vmem>>, vector<2x32xf32>
    tpu.vector_store %arg12[%c0_13, %c0_14], %28 {strides = array<i32>} : memref<16x32xf32, #tpu.memory_space<vmem>>, vector<2x32xf32>,
    %30 = vector.extract_strided_slice %7 {offsets = [2, 0], sizes = [2, 128], strides = [1, 1]} : vector<16x128xf32> to vector<2x128xf32>
    %cst_15 = arith.constant dense<0.000000e+00> : vector<2x128xf32>
    %31 = tpu.matmul %28, %2, %cst_15 {dimension_numbers = #tpu.dot_dimension_numbers<[1], [0], [0], [1], [0, 0, 1, 1], [], []>} : vector<2x32xf32>, vector<32x128xf32>, vector<2x128xf32> -> vector<2x128xf32>
    %32 = arith.addf %30, %31 : vector<2x128xf32>
    %33 = vector.extract_strided_slice %32 {offsets = [0, 0], sizes = [2, 96], strides = [1, 1]} : vector<2x128xf32> to vector<2x96xf32>
    %34 = arith.negf %33 : vector<2x96xf32>
    %35 = math.exp %34 : vector<2x96xf32>
    %cst_16 = arith.constant 1.000000e+00 : f32
    %36 = vector.broadcast %cst_16 : f32 to vector<2x96xf32>
    %37 = arith.addf %36, %35 : vector<2x96xf32>
    %38 = arith.divf %36, %37 : vector<2x96xf32>
    %39 = vector.extract_strided_slice %38 {offsets = [0, 0], sizes = [2, 32], strides = [1, 1]} : vector<2x96xf32> to vector<2x32xf32>
    %40 = vector.extract_strided_slice %38 {offsets = [0, 32], sizes = [2, 32], strides = [1, 1]} : vector<2x96xf32> to vector<2x32xf32>
    %41 = vector.extract_strided_slice %38 {offsets = [0, 64], sizes = [2, 32], strides = [1, 1]} : vector<2x96xf32> to vector<2x32xf32>
    %42 = vector.extract_strided_slice %32 {offsets = [0, 96], sizes = [2, 32], strides = [1, 1]} : vector<2x128xf32> to vector<2x32xf32>
    %43 = math.tanh %42 : vector<2x32xf32>
    %44 = arith.mulf %40, %26 : vector<2x32xf32>
    %45 = arith.mulf %39, %43 : vector<2x32xf32>
    %46 = arith.addf %44, %45 : vector<2x32xf32>
    %47 = math.tanh %46 : vector<2x32xf32>
    %48 = arith.mulf %41, %47 : vector<2x32xf32>
    %c2 = arith.constant 2 : index
    %c0_17 = arith.constant 0 : index
    %49 = vector.load %arg12[%c2, %c0_17] : memref<16x32xf32, #tpu.memory_space<vmem>>, vector<2x32xf32>
    tpu.vector_store %arg12[%c2, %c0_17], %48 {strides = array<i32>} : memref<16x32xf32, #tpu.memory_space<vmem>>, vector<2x32xf32>,
    %50 = vector.extract_strided_slice %7 {offsets = [4, 0], sizes = [2, 128], strides = [1, 1]} : vector<16x128xf32> to vector<2x128xf32>
    %cst_18 = arith.constant dense<0.000000e+00> : vector<2x128xf32>
    %51 = tpu.matmul %48, %2, %cst_18 {dimension_numbers = #tpu.dot_dimension_numbers<[1], [0], [0], [1], [0, 0, 1, 1], [], []>} : vector<2x32xf32>, vector<32x128xf32>, vector<2x128xf32> -> vector<2x128xf32>
    %52 = arith.addf %50, %51 : vector<2x128xf32>
    %53 = vector.extract_strided_slice %52 {offsets = [0, 0], sizes = [2, 96], strides = [1, 1]} : vector<2x128xf32> to vector<2x96xf32>
    %54 = arith.negf %53 : vector<2x96xf32>
    %55 = math.exp %54 : vector<2x96xf32>
    %cst_19 = arith.constant 1.000000e+00 : f32
    %56 = vector.broadcast %cst_19 : f32 to vector<2x96xf32>
    %57 = arith.addf %56, %55 : vector<2x96xf32>
    %58 = arith.divf %56, %57 : vector<2x96xf32>
    %59 = vector.extract_strided_slice %58 {offsets = [0, 0], sizes = [2, 32], strides = [1, 1]} : vector<2x96xf32> to vector<2x32xf32>
    %60 = vector.extract_strided_slice %58 {offsets = [0, 32], sizes = [2, 32], strides = [1, 1]} : vector<2x96xf32> to vector<2x32xf32>
    %61 = vector.extract_strided_slice %58 {offsets = [0, 64], sizes = [2, 32], strides = [1, 1]} : vector<2x96xf32> to vector<2x32xf32>
    %62 = vector.extract_strided_slice %52 {offsets = [0, 96], sizes = [2, 32], strides = [1, 1]} : vector<2x128xf32> to vector<2x32xf32>
    %63 = math.tanh %62 : vector<2x32xf32>
    %64 = arith.mulf %60, %46 : vector<2x32xf32>
    %65 = arith.mulf %59, %63 : vector<2x32xf32>
    %66 = arith.addf %64, %65 : vector<2x32xf32>
    %67 = math.tanh %66 : vector<2x32xf32>
    %68 = arith.mulf %61, %67 : vector<2x32xf32>
    %c4 = arith.constant 4 : index
    %c0_20 = arith.constant 0 : index
    %69 = vector.load %arg12[%c4, %c0_20] : memref<16x32xf32, #tpu.memory_space<vmem>>, vector<2x32xf32>
    tpu.vector_store %arg12[%c4, %c0_20], %68 {strides = array<i32>} : memref<16x32xf32, #tpu.memory_space<vmem>>, vector<2x32xf32>,
    %70 = vector.extract_strided_slice %7 {offsets = [6, 0], sizes = [2, 128], strides = [1, 1]} : vector<16x128xf32> to vector<2x128xf32>
    %cst_21 = arith.constant dense<0.000000e+00> : vector<2x128xf32>
    %71 = tpu.matmul %68, %2, %cst_21 {dimension_numbers = #tpu.dot_dimension_numbers<[1], [0], [0], [1], [0, 0, 1, 1], [], []>} : vector<2x32xf32>, vector<32x128xf32>, vector<2x128xf32> -> vector<2x128xf32>
    %72 = arith.addf %70, %71 : vector<2x128xf32>
    %73 = vector.extract_strided_slice %72 {offsets = [0, 0], sizes = [2, 96], strides = [1, 1]} : vector<2x128xf32> to vector<2x96xf32>
    %74 = arith.negf %73 : vector<2x96xf32>
    %75 = math.exp %74 : vector<2x96xf32>
    %cst_22 = arith.constant 1.000000e+00 : f32
    %76 = vector.broadcast %cst_22 : f32 to vector<2x96xf32>
    %77 = arith.addf %76, %75 : vector<2x96xf32>
    %78 = arith.divf %76, %77 : vector<2x96xf32>
    %79 = vector.extract_strided_slice %78 {offsets = [0, 0], sizes = [2, 32], strides = [1, 1]} : vector<2x96xf32> to vector<2x32xf32>
    %80 = vector.extract_strided_slice %78 {offsets = [0, 32], sizes = [2, 32], strides = [1, 1]} : vector<2x96xf32> to vector<2x32xf32>
    %81 = vector.extract_strided_slice %78 {offsets = [0, 64], sizes = [2, 32], strides = [1, 1]} : vector<2x96xf32> to vector<2x32xf32>
    %82 = vector.extract_strided_slice %72 {offsets = [0, 96], sizes = [2, 32], strides = [1, 1]} : vector<2x128xf32> to vector<2x32xf32>
    %83 = math.tanh %82 : vector<2x32xf32>
    %84 = arith.mulf %80, %66 : vector<2x32xf32>
    %85 = arith.mulf %79, %83 : vector<2x32xf32>
    %86 = arith.addf %84, %85 : vector<2x32xf32>
    %87 = math.tanh %86 : vector<2x32xf32>
    %88 = arith.mulf %81, %87 : vector<2x32xf32>
    %c6 = arith.constant 6 : index
    %c0_23 = arith.constant 0 : index
    %89 = vector.load %arg12[%c6, %c0_23] : memref<16x32xf32, #tpu.memory_space<vmem>>, vector<2x32xf32>
    tpu.vector_store %arg12[%c6, %c0_23], %88 {strides = array<i32>} : memref<16x32xf32, #tpu.memory_space<vmem>>, vector<2x32xf32>,
    %90 = vector.extract_strided_slice %7 {offsets = [8, 0], sizes = [2, 128], strides = [1, 1]} : vector<16x128xf32> to vector<2x128xf32>
    %cst_24 = arith.constant dense<0.000000e+00> : vector<2x128xf32>
    %91 = tpu.matmul %88, %2, %cst_24 {dimension_numbers = #tpu.dot_dimension_numbers<[1], [0], [0], [1], [0, 0, 1, 1], [], []>} : vector<2x32xf32>, vector<32x128xf32>, vector<2x128xf32> -> vector<2x128xf32>
    %92 = arith.addf %90, %91 : vector<2x128xf32>
    %93 = vector.extract_strided_slice %92 {offsets = [0, 0], sizes = [2, 96], strides = [1, 1]} : vector<2x128xf32> to vector<2x96xf32>
    %94 = arith.negf %93 : vector<2x96xf32>
    %95 = math.exp %94 : vector<2x96xf32>
    %cst_25 = arith.constant 1.000000e+00 : f32
    %96 = vector.broadcast %cst_25 : f32 to vector<2x96xf32>
    %97 = arith.addf %96, %95 : vector<2x96xf32>
    %98 = arith.divf %96, %97 : vector<2x96xf32>
    %99 = vector.extract_strided_slice %98 {offsets = [0, 0], sizes = [2, 32], strides = [1, 1]} : vector<2x96xf32> to vector<2x32xf32>
    %100 = vector.extract_strided_slice %98 {offsets = [0, 32], sizes = [2, 32], strides = [1, 1]} : vector<2x96xf32> to vector<2x32xf32>
    %101 = vector.extract_strided_slice %98 {offsets = [0, 64], sizes = [2, 32], strides = [1, 1]} : vector<2x96xf32> to vector<2x32xf32>
    %102 = vector.extract_strided_slice %92 {offsets = [0, 96], sizes = [2, 32], strides = [1, 1]} : vector<2x128xf32> to vector<2x32xf32>
    %103 = math.tanh %102 : vector<2x32xf32>
    %104 = arith.mulf %100, %86 : vector<2x32xf32>
    %105 = arith.mulf %99, %103 : vector<2x32xf32>
    %106 = arith.addf %104, %105 : vector<2x32xf32>
    %107 = math.tanh %106 : vector<2x32xf32>
    %108 = arith.mulf %101, %107 : vector<2x32xf32>
    %c8 = arith.constant 8 : index
    %c0_26 = arith.constant 0 : index
    %109 = vector.load %arg12[%c8, %c0_26] : memref<16x32xf32, #tpu.memory_space<vmem>>, vector<2x32xf32>
    tpu.vector_store %arg12[%c8, %c0_26], %108 {strides = array<i32>} : memref<16x32xf32, #tpu.memory_space<vmem>>, vector<2x32xf32>,
    %110 = vector.extract_strided_slice %7 {offsets = [10, 0], sizes = [2, 128], strides = [1, 1]} : vector<16x128xf32> to vector<2x128xf32>
    %cst_27 = arith.constant dense<0.000000e+00> : vector<2x128xf32>
    %111 = tpu.matmul %108, %2, %cst_27 {dimension_numbers = #tpu.dot_dimension_numbers<[1], [0], [0], [1], [0, 0, 1, 1], [], []>} : vector<2x32xf32>, vector<32x128xf32>, vector<2x128xf32> -> vector<2x128xf32>
    %112 = arith.addf %110, %111 : vector<2x128xf32>
    %113 = vector.extract_strided_slice %112 {offsets = [0, 0], sizes = [2, 96], strides = [1, 1]} : vector<2x128xf32> to vector<2x96xf32>
    %114 = arith.negf %113 : vector<2x96xf32>
    %115 = math.exp %114 : vector<2x96xf32>
    %cst_28 = arith.constant 1.000000e+00 : f32
    %116 = vector.broadcast %cst_28 : f32 to vector<2x96xf32>
    %117 = arith.addf %116, %115 : vector<2x96xf32>
    %118 = arith.divf %116, %117 : vector<2x96xf32>
    %119 = vector.extract_strided_slice %118 {offsets = [0, 0], sizes = [2, 32], strides = [1, 1]} : vector<2x96xf32> to vector<2x32xf32>
    %120 = vector.extract_strided_slice %118 {offsets = [0, 32], sizes = [2, 32], strides = [1, 1]} : vector<2x96xf32> to vector<2x32xf32>
    %121 = vector.extract_strided_slice %118 {offsets = [0, 64], sizes = [2, 32], strides = [1, 1]} : vector<2x96xf32> to vector<2x32xf32>
    %122 = vector.extract_strided_slice %112 {offsets = [0, 96], sizes = [2, 32], strides = [1, 1]} : vector<2x128xf32> to vector<2x32xf32>
    %123 = math.tanh %122 : vector<2x32xf32>
    %124 = arith.mulf %120, %106 : vector<2x32xf32>
    %125 = arith.mulf %119, %123 : vector<2x32xf32>
    %126 = arith.addf %124, %125 : vector<2x32xf32>
    %127 = math.tanh %126 : vector<2x32xf32>
    %128 = arith.mulf %121, %127 : vector<2x32xf32>
    %c10 = arith.constant 10 : index
    %c0_29 = arith.constant 0 : index
    %129 = vector.load %arg12[%c10, %c0_29] : memref<16x32xf32, #tpu.memory_space<vmem>>, vector<2x32xf32>
    tpu.vector_store %arg12[%c10, %c0_29], %128 {strides = array<i32>} : memref<16x32xf32, #tpu.memory_space<vmem>>, vector<2x32xf32>,
    %130 = vector.extract_strided_slice %7 {offsets = [12, 0], sizes = [2, 128], strides = [1, 1]} : vector<16x128xf32> to vector<2x128xf32>
    %cst_30 = arith.constant dense<0.000000e+00> : vector<2x128xf32>
    %131 = tpu.matmul %128, %2, %cst_30 {dimension_numbers = #tpu.dot_dimension_numbers<[1], [0], [0], [1], [0, 0, 1, 1], [], []>} : vector<2x32xf32>, vector<32x128xf32>, vector<2x128xf32> -> vector<2x128xf32>
    %132 = arith.addf %130, %131 : vector<2x128xf32>
    %133 = vector.extract_strided_slice %132 {offsets = [0, 0], sizes = [2, 96], strides = [1, 1]} : vector<2x128xf32> to vector<2x96xf32>
    %134 = arith.negf %133 : vector<2x96xf32>
    %135 = math.exp %134 : vector<2x96xf32>
    %cst_31 = arith.constant 1.000000e+00 : f32
    %136 = vector.broadcast %cst_31 : f32 to vector<2x96xf32>
    %137 = arith.addf %136, %135 : vector<2x96xf32>
    %138 = arith.divf %136, %137 : vector<2x96xf32>
    %139 = vector.extract_strided_slice %138 {offsets = [0, 0], sizes = [2, 32], strides = [1, 1]} : vector<2x96xf32> to vector<2x32xf32>
    %140 = vector.extract_strided_slice %138 {offsets = [0, 32], sizes = [2, 32], strides = [1, 1]} : vector<2x96xf32> to vector<2x32xf32>
    %141 = vector.extract_strided_slice %138 {offsets = [0, 64], sizes = [2, 32], strides = [1, 1]} : vector<2x96xf32> to vector<2x32xf32>
    %142 = vector.extract_strided_slice %132 {offsets = [0, 96], sizes = [2, 32], strides = [1, 1]} : vector<2x128xf32> to vector<2x32xf32>
    %143 = math.tanh %142 : vector<2x32xf32>
    %144 = arith.mulf %140, %126 : vector<2x32xf32>
    %145 = arith.mulf %139, %143 : vector<2x32xf32>
    %146 = arith.addf %144, %145 : vector<2x32xf32>
    %147 = math.tanh %146 : vector<2x32xf32>
    %148 = arith.mulf %141, %147 : vector<2x32xf32>
    %c12 = arith.constant 12 : index
    %c0_32 = arith.constant 0 : index
    %149 = vector.load %arg12[%c12, %c0_32] : memref<16x32xf32, #tpu.memory_space<vmem>>, vector<2x32xf32>
    tpu.vector_store %arg12[%c12, %c0_32], %148 {strides = array<i32>} : memref<16x32xf32, #tpu.memory_space<vmem>>, vector<2x32xf32>,
    %150 = vector.extract_strided_slice %7 {offsets = [14, 0], sizes = [2, 128], strides = [1, 1]} : vector<16x128xf32> to vector<2x128xf32>
    %cst_33 = arith.constant dense<0.000000e+00> : vector<2x128xf32>
    %151 = tpu.matmul %148, %2, %cst_33 {dimension_numbers = #tpu.dot_dimension_numbers<[1], [0], [0], [1], [0, 0, 1, 1], [], []>} : vector<2x32xf32>, vector<32x128xf32>, vector<2x128xf32> -> vector<2x128xf32>
    %152 = arith.addf %150, %151 : vector<2x128xf32>
    %153 = vector.extract_strided_slice %152 {offsets = [0, 0], sizes = [2, 96], strides = [1, 1]} : vector<2x128xf32> to vector<2x96xf32>
    %154 = arith.negf %153 : vector<2x96xf32>
    %155 = math.exp %154 : vector<2x96xf32>
    %cst_34 = arith.constant 1.000000e+00 : f32
    %156 = vector.broadcast %cst_34 : f32 to vector<2x96xf32>
    %157 = arith.addf %156, %155 : vector<2x96xf32>
    %158 = arith.divf %156, %157 : vector<2x96xf32>
    %159 = vector.extract_strided_slice %158 {offsets = [0, 0], sizes = [2, 32], strides = [1, 1]} : vector<2x96xf32> to vector<2x32xf32>
    %160 = vector.extract_strided_slice %158 {offsets = [0, 32], sizes = [2, 32], strides = [1, 1]} : vector<2x96xf32> to vector<2x32xf32>
    %161 = vector.extract_strided_slice %158 {offsets = [0, 64], sizes = [2, 32], strides = [1, 1]} : vector<2x96xf32> to vector<2x32xf32>
    %162 = vector.extract_strided_slice %152 {offsets = [0, 96], sizes = [2, 32], strides = [1, 1]} : vector<2x128xf32> to vector<2x32xf32>
    %163 = math.tanh %162 : vector<2x32xf32>
    %164 = arith.mulf %160, %146 : vector<2x32xf32>
    %165 = arith.mulf %159, %163 : vector<2x32xf32>
    %166 = arith.addf %164, %165 : vector<2x32xf32>
    %167 = math.tanh %166 : vector<2x32xf32>
    %168 = arith.mulf %161, %167 : vector<2x32xf32>
    %c14 = arith.constant 14 : index
    %c0_35 = arith.constant 0 : index
    %169 = vector.load %arg12[%c14, %c0_35] : memref<16x32xf32, #tpu.memory_space<vmem>>, vector<2x32xf32>
    tpu.vector_store %arg12[%c14, %c0_35], %168 {strides = array<i32>} : memref<16x32xf32, #tpu.memory_space<vmem>>, vector<2x32xf32>,
    %c0_36 = arith.constant 0 : index
    %c0_37 = arith.constant 0 : index
    %170 = vector.load %arg4[%c0_36, %c0_37] : memref<32x128xf32, #tpu.memory_space<vmem>>, vector<32x128xf32>
    %c0_38 = arith.constant 0 : index
    %c0_39 = arith.constant 0 : index
    %171 = vector.load %arg5[%c0_38, %c0_39] : memref<32x128xf32, #tpu.memory_space<vmem>>, vector<32x128xf32>
    %c0_40 = arith.constant 0 : index
    %c0_41 = arith.constant 0 : index
    %172 = vector.load %arg6[%c0_40, %c0_41] : memref<1x128xf32, #tpu.memory_space<vmem>>, vector<1x128xf32>
    %c0_42 = arith.constant 0 : index
    %c0_43 = arith.constant 0 : index
    %173 = vector.load %arg12[%c0_42, %c0_43] : memref<16x32xf32, #tpu.memory_space<vmem>>, vector<16x32xf32>
    %cst_44 = arith.constant dense<0.000000e+00> : vector<16x128xf32>
    %174 = tpu.matmul %173, %170, %cst_44 {dimension_numbers = #tpu.dot_dimension_numbers<[1], [0], [0], [1], [0, 0, 1, 1], [], []>} : vector<16x32xf32>, vector<32x128xf32>, vector<16x128xf32> -> vector<16x128xf32>
    %175 = vector.broadcast %172 : vector<1x128xf32> to vector<16x128xf32>
    %176 = arith.addf %174, %175 : vector<16x128xf32>
    %cst_45 = arith.constant 0.000000e+00 : f32
    %177 = vector.broadcast %cst_45 : f32 to vector<2x32xf32>
    %cst_46 = arith.constant 0.000000e+00 : f32
    %178 = vector.broadcast %cst_46 : f32 to vector<2x32xf32>
    %179 = vector.extract_strided_slice %176 {offsets = [0, 0], sizes = [2, 128], strides = [1, 1]} : vector<16x128xf32> to vector<2x128xf32>
    %cst_47 = arith.constant dense<0.000000e+00> : vector<2x128xf32>
    %180 = tpu.matmul %177, %171, %cst_47 {dimension_numbers = #tpu.dot_dimension_numbers<[1], [0], [0], [1], [0, 0, 1, 1], [], []>} : vector<2x32xf32>, vector<32x128xf32>, vector<2x128xf32> -> vector<2x128xf32>
    %181 = arith.addf %179, %180 : vector<2x128xf32>
    %182 = vector.extract_strided_slice %181 {offsets = [0, 0], sizes = [2, 96], strides = [1, 1]} : vector<2x128xf32> to vector<2x96xf32>
    %183 = arith.negf %182 : vector<2x96xf32>
    %184 = math.exp %183 : vector<2x96xf32>
    %cst_48 = arith.constant 1.000000e+00 : f32
    %185 = vector.broadcast %cst_48 : f32 to vector<2x96xf32>
    %186 = arith.addf %185, %184 : vector<2x96xf32>
    %187 = arith.divf %185, %186 : vector<2x96xf32>
    %188 = vector.extract_strided_slice %187 {offsets = [0, 0], sizes = [2, 32], strides = [1, 1]} : vector<2x96xf32> to vector<2x32xf32>
    %189 = vector.extract_strided_slice %187 {offsets = [0, 32], sizes = [2, 32], strides = [1, 1]} : vector<2x96xf32> to vector<2x32xf32>
    %190 = vector.extract_strided_slice %187 {offsets = [0, 64], sizes = [2, 32], strides = [1, 1]} : vector<2x96xf32> to vector<2x32xf32>
    %191 = vector.extract_strided_slice %181 {offsets = [0, 96], sizes = [2, 32], strides = [1, 1]} : vector<2x128xf32> to vector<2x32xf32>
    %192 = math.tanh %191 : vector<2x32xf32>
    %193 = arith.mulf %189, %178 : vector<2x32xf32>
    %194 = arith.mulf %188, %192 : vector<2x32xf32>
    %195 = arith.addf %193, %194 : vector<2x32xf32>
    %196 = math.tanh %195 : vector<2x32xf32>
    %197 = arith.mulf %190, %196 : vector<2x32xf32>
    %198 = vector.extract_strided_slice %176 {offsets = [2, 0], sizes = [2, 128], strides = [1, 1]} : vector<16x128xf32> to vector<2x128xf32>
    %cst_49 = arith.constant dense<0.000000e+00> : vector<2x128xf32>
    %199 = tpu.matmul %197, %171, %cst_49 {dimension_numbers = #tpu.dot_dimension_numbers<[1], [0], [0], [1], [0, 0, 1, 1], [], []>} : vector<2x32xf32>, vector<32x128xf32>, vector<2x128xf32> -> vector<2x128xf32>
    %200 = arith.addf %198, %199 : vector<2x128xf32>
    %201 = vector.extract_strided_slice %200 {offsets = [0, 0], sizes = [2, 96], strides = [1, 1]} : vector<2x128xf32> to vector<2x96xf32>
    %202 = arith.negf %201 : vector<2x96xf32>
    %203 = math.exp %202 : vector<2x96xf32>
    %cst_50 = arith.constant 1.000000e+00 : f32
    %204 = vector.broadcast %cst_50 : f32 to vector<2x96xf32>
    %205 = arith.addf %204, %203 : vector<2x96xf32>
    %206 = arith.divf %204, %205 : vector<2x96xf32>
    %207 = vector.extract_strided_slice %206 {offsets = [0, 0], sizes = [2, 32], strides = [1, 1]} : vector<2x96xf32> to vector<2x32xf32>
    %208 = vector.extract_strided_slice %206 {offsets = [0, 32], sizes = [2, 32], strides = [1, 1]} : vector<2x96xf32> to vector<2x32xf32>
    %209 = vector.extract_strided_slice %206 {offsets = [0, 64], sizes = [2, 32], strides = [1, 1]} : vector<2x96xf32> to vector<2x32xf32>
    %210 = vector.extract_strided_slice %200 {offsets = [0, 96], sizes = [2, 32], strides = [1, 1]} : vector<2x128xf32> to vector<2x32xf32>
    %211 = math.tanh %210 : vector<2x32xf32>
    %212 = arith.mulf %208, %195 : vector<2x32xf32>
    %213 = arith.mulf %207, %211 : vector<2x32xf32>
    %214 = arith.addf %212, %213 : vector<2x32xf32>
    %215 = math.tanh %214 : vector<2x32xf32>
    %216 = arith.mulf %209, %215 : vector<2x32xf32>
    %217 = vector.extract_strided_slice %176 {offsets = [4, 0], sizes = [2, 128], strides = [1, 1]} : vector<16x128xf32> to vector<2x128xf32>
    %cst_51 = arith.constant dense<0.000000e+00> : vector<2x128xf32>
    %218 = tpu.matmul %216, %171, %cst_51 {dimension_numbers = #tpu.dot_dimension_numbers<[1], [0], [0], [1], [0, 0, 1, 1], [], []>} : vector<2x32xf32>, vector<32x128xf32>, vector<2x128xf32> -> vector<2x128xf32>
    %219 = arith.addf %217, %218 : vector<2x128xf32>
    %220 = vector.extract_strided_slice %219 {offsets = [0, 0], sizes = [2, 96], strides = [1, 1]} : vector<2x128xf32> to vector<2x96xf32>
    %221 = arith.negf %220 : vector<2x96xf32>
    %222 = math.exp %221 : vector<2x96xf32>
    %cst_52 = arith.constant 1.000000e+00 : f32
    %223 = vector.broadcast %cst_52 : f32 to vector<2x96xf32>
    %224 = arith.addf %223, %222 : vector<2x96xf32>
    %225 = arith.divf %223, %224 : vector<2x96xf32>
    %226 = vector.extract_strided_slice %225 {offsets = [0, 0], sizes = [2, 32], strides = [1, 1]} : vector<2x96xf32> to vector<2x32xf32>
    %227 = vector.extract_strided_slice %225 {offsets = [0, 32], sizes = [2, 32], strides = [1, 1]} : vector<2x96xf32> to vector<2x32xf32>
    %228 = vector.extract_strided_slice %225 {offsets = [0, 64], sizes = [2, 32], strides = [1, 1]} : vector<2x96xf32> to vector<2x32xf32>
    %229 = vector.extract_strided_slice %219 {offsets = [0, 96], sizes = [2, 32], strides = [1, 1]} : vector<2x128xf32> to vector<2x32xf32>
    %230 = math.tanh %229 : vector<2x32xf32>
    %231 = arith.mulf %227, %214 : vector<2x32xf32>
    %232 = arith.mulf %226, %230 : vector<2x32xf32>
    %233 = arith.addf %231, %232 : vector<2x32xf32>
    %234 = math.tanh %233 : vector<2x32xf32>
    %235 = arith.mulf %228, %234 : vector<2x32xf32>
    %236 = vector.extract_strided_slice %176 {offsets = [6, 0], sizes = [2, 128], strides = [1, 1]} : vector<16x128xf32> to vector<2x128xf32>
    %cst_53 = arith.constant dense<0.000000e+00> : vector<2x128xf32>
    %237 = tpu.matmul %235, %171, %cst_53 {dimension_numbers = #tpu.dot_dimension_numbers<[1], [0], [0], [1], [0, 0, 1, 1], [], []>} : vector<2x32xf32>, vector<32x128xf32>, vector<2x128xf32> -> vector<2x128xf32>
    %238 = arith.addf %236, %237 : vector<2x128xf32>
    %239 = vector.extract_strided_slice %238 {offsets = [0, 0], sizes = [2, 96], strides = [1, 1]} : vector<2x128xf32> to vector<2x96xf32>
    %240 = arith.negf %239 : vector<2x96xf32>
    %241 = math.exp %240 : vector<2x96xf32>
    %cst_54 = arith.constant 1.000000e+00 : f32
    %242 = vector.broadcast %cst_54 : f32 to vector<2x96xf32>
    %243 = arith.addf %242, %241 : vector<2x96xf32>
    %244 = arith.divf %242, %243 : vector<2x96xf32>
    %245 = vector.extract_strided_slice %244 {offsets = [0, 0], sizes = [2, 32], strides = [1, 1]} : vector<2x96xf32> to vector<2x32xf32>
    %246 = vector.extract_strided_slice %244 {offsets = [0, 32], sizes = [2, 32], strides = [1, 1]} : vector<2x96xf32> to vector<2x32xf32>
    %247 = vector.extract_strided_slice %244 {offsets = [0, 64], sizes = [2, 32], strides = [1, 1]} : vector<2x96xf32> to vector<2x32xf32>
    %248 = vector.extract_strided_slice %238 {offsets = [0, 96], sizes = [2, 32], strides = [1, 1]} : vector<2x128xf32> to vector<2x32xf32>
    %249 = math.tanh %248 : vector<2x32xf32>
    %250 = arith.mulf %246, %233 : vector<2x32xf32>
    %251 = arith.mulf %245, %249 : vector<2x32xf32>
    %252 = arith.addf %250, %251 : vector<2x32xf32>
    %253 = math.tanh %252 : vector<2x32xf32>
    %254 = arith.mulf %247, %253 : vector<2x32xf32>
    %255 = vector.extract_strided_slice %176 {offsets = [8, 0], sizes = [2, 128], strides = [1, 1]} : vector<16x128xf32> to vector<2x128xf32>
    %cst_55 = arith.constant dense<0.000000e+00> : vector<2x128xf32>
    %256 = tpu.matmul %254, %171, %cst_55 {dimension_numbers = #tpu.dot_dimension_numbers<[1], [0], [0], [1], [0, 0, 1, 1], [], []>} : vector<2x32xf32>, vector<32x128xf32>, vector<2x128xf32> -> vector<2x128xf32>
    %257 = arith.addf %255, %256 : vector<2x128xf32>
    %258 = vector.extract_strided_slice %257 {offsets = [0, 0], sizes = [2, 96], strides = [1, 1]} : vector<2x128xf32> to vector<2x96xf32>
    %259 = arith.negf %258 : vector<2x96xf32>
    %260 = math.exp %259 : vector<2x96xf32>
    %cst_56 = arith.constant 1.000000e+00 : f32
    %261 = vector.broadcast %cst_56 : f32 to vector<2x96xf32>
    %262 = arith.addf %261, %260 : vector<2x96xf32>
    %263 = arith.divf %261, %262 : vector<2x96xf32>
    %264 = vector.extract_strided_slice %263 {offsets = [0, 0], sizes = [2, 32], strides = [1, 1]} : vector<2x96xf32> to vector<2x32xf32>
    %265 = vector.extract_strided_slice %263 {offsets = [0, 32], sizes = [2, 32], strides = [1, 1]} : vector<2x96xf32> to vector<2x32xf32>
    %266 = vector.extract_strided_slice %263 {offsets = [0, 64], sizes = [2, 32], strides = [1, 1]} : vector<2x96xf32> to vector<2x32xf32>
    %267 = vector.extract_strided_slice %257 {offsets = [0, 96], sizes = [2, 32], strides = [1, 1]} : vector<2x128xf32> to vector<2x32xf32>
    %268 = math.tanh %267 : vector<2x32xf32>
    %269 = arith.mulf %265, %252 : vector<2x32xf32>
    %270 = arith.mulf %264, %268 : vector<2x32xf32>
    %271 = arith.addf %269, %270 : vector<2x32xf32>
    %272 = math.tanh %271 : vector<2x32xf32>
    %273 = arith.mulf %266, %272 : vector<2x32xf32>
    %274 = vector.extract_strided_slice %176 {offsets = [10, 0], sizes = [2, 128], strides = [1, 1]} : vector<16x128xf32> to vector<2x128xf32>
    %cst_57 = arith.constant dense<0.000000e+00> : vector<2x128xf32>
    %275 = tpu.matmul %273, %171, %cst_57 {dimension_numbers = #tpu.dot_dimension_numbers<[1], [0], [0], [1], [0, 0, 1, 1], [], []>} : vector<2x32xf32>, vector<32x128xf32>, vector<2x128xf32> -> vector<2x128xf32>
    %276 = arith.addf %274, %275 : vector<2x128xf32>
    %277 = vector.extract_strided_slice %276 {offsets = [0, 0], sizes = [2, 96], strides = [1, 1]} : vector<2x128xf32> to vector<2x96xf32>
    %278 = arith.negf %277 : vector<2x96xf32>
    %279 = math.exp %278 : vector<2x96xf32>
    %cst_58 = arith.constant 1.000000e+00 : f32
    %280 = vector.broadcast %cst_58 : f32 to vector<2x96xf32>
    %281 = arith.addf %280, %279 : vector<2x96xf32>
    %282 = arith.divf %280, %281 : vector<2x96xf32>
    %283 = vector.extract_strided_slice %282 {offsets = [0, 0], sizes = [2, 32], strides = [1, 1]} : vector<2x96xf32> to vector<2x32xf32>
    %284 = vector.extract_strided_slice %282 {offsets = [0, 32], sizes = [2, 32], strides = [1, 1]} : vector<2x96xf32> to vector<2x32xf32>
    %285 = vector.extract_strided_slice %282 {offsets = [0, 64], sizes = [2, 32], strides = [1, 1]} : vector<2x96xf32> to vector<2x32xf32>
    %286 = vector.extract_strided_slice %276 {offsets = [0, 96], sizes = [2, 32], strides = [1, 1]} : vector<2x128xf32> to vector<2x32xf32>
    %287 = math.tanh %286 : vector<2x32xf32>
    %288 = arith.mulf %284, %271 : vector<2x32xf32>
    %289 = arith.mulf %283, %287 : vector<2x32xf32>
    %290 = arith.addf %288, %289 : vector<2x32xf32>
    %291 = math.tanh %290 : vector<2x32xf32>
    %292 = arith.mulf %285, %291 : vector<2x32xf32>
    %293 = vector.extract_strided_slice %176 {offsets = [12, 0], sizes = [2, 128], strides = [1, 1]} : vector<16x128xf32> to vector<2x128xf32>
    %cst_59 = arith.constant dense<0.000000e+00> : vector<2x128xf32>
    %294 = tpu.matmul %292, %171, %cst_59 {dimension_numbers = #tpu.dot_dimension_numbers<[1], [0], [0], [1], [0, 0, 1, 1], [], []>} : vector<2x32xf32>, vector<32x128xf32>, vector<2x128xf32> -> vector<2x128xf32>
    %295 = arith.addf %293, %294 : vector<2x128xf32>
    %296 = vector.extract_strided_slice %295 {offsets = [0, 0], sizes = [2, 96], strides = [1, 1]} : vector<2x128xf32> to vector<2x96xf32>
    %297 = arith.negf %296 : vector<2x96xf32>
    %298 = math.exp %297 : vector<2x96xf32>
    %cst_60 = arith.constant 1.000000e+00 : f32
    %299 = vector.broadcast %cst_60 : f32 to vector<2x96xf32>
    %300 = arith.addf %299, %298 : vector<2x96xf32>
    %301 = arith.divf %299, %300 : vector<2x96xf32>
    %302 = vector.extract_strided_slice %301 {offsets = [0, 0], sizes = [2, 32], strides = [1, 1]} : vector<2x96xf32> to vector<2x32xf32>
    %303 = vector.extract_strided_slice %301 {offsets = [0, 32], sizes = [2, 32], strides = [1, 1]} : vector<2x96xf32> to vector<2x32xf32>
    %304 = vector.extract_strided_slice %301 {offsets = [0, 64], sizes = [2, 32], strides = [1, 1]} : vector<2x96xf32> to vector<2x32xf32>
    %305 = vector.extract_strided_slice %295 {offsets = [0, 96], sizes = [2, 32], strides = [1, 1]} : vector<2x128xf32> to vector<2x32xf32>
    %306 = math.tanh %305 : vector<2x32xf32>
    %307 = arith.mulf %303, %290 : vector<2x32xf32>
    %308 = arith.mulf %302, %306 : vector<2x32xf32>
    %309 = arith.addf %307, %308 : vector<2x32xf32>
    %310 = math.tanh %309 : vector<2x32xf32>
    %311 = arith.mulf %304, %310 : vector<2x32xf32>
    %312 = vector.extract_strided_slice %176 {offsets = [14, 0], sizes = [2, 128], strides = [1, 1]} : vector<16x128xf32> to vector<2x128xf32>
    %cst_61 = arith.constant dense<0.000000e+00> : vector<2x128xf32>
    %313 = tpu.matmul %311, %171, %cst_61 {dimension_numbers = #tpu.dot_dimension_numbers<[1], [0], [0], [1], [0, 0, 1, 1], [], []>} : vector<2x32xf32>, vector<32x128xf32>, vector<2x128xf32> -> vector<2x128xf32>
    %314 = arith.addf %312, %313 : vector<2x128xf32>
    %315 = vector.extract_strided_slice %314 {offsets = [0, 0], sizes = [2, 96], strides = [1, 1]} : vector<2x128xf32> to vector<2x96xf32>
    %316 = arith.negf %315 : vector<2x96xf32>
    %317 = math.exp %316 : vector<2x96xf32>
    %cst_62 = arith.constant 1.000000e+00 : f32
    %318 = vector.broadcast %cst_62 : f32 to vector<2x96xf32>
    %319 = arith.addf %318, %317 : vector<2x96xf32>
    %320 = arith.divf %318, %319 : vector<2x96xf32>
    %321 = vector.extract_strided_slice %320 {offsets = [0, 0], sizes = [2, 32], strides = [1, 1]} : vector<2x96xf32> to vector<2x32xf32>
    %322 = vector.extract_strided_slice %320 {offsets = [0, 32], sizes = [2, 32], strides = [1, 1]} : vector<2x96xf32> to vector<2x32xf32>
    %323 = vector.extract_strided_slice %320 {offsets = [0, 64], sizes = [2, 32], strides = [1, 1]} : vector<2x96xf32> to vector<2x32xf32>
    %324 = vector.extract_strided_slice %314 {offsets = [0, 96], sizes = [2, 32], strides = [1, 1]} : vector<2x128xf32> to vector<2x32xf32>
    %325 = math.tanh %324 : vector<2x32xf32>
    %326 = arith.mulf %322, %309 : vector<2x32xf32>
    %327 = arith.mulf %321, %325 : vector<2x32xf32>
    %328 = arith.addf %326, %327 : vector<2x32xf32>
    %329 = math.tanh %328 : vector<2x32xf32>
    %330 = arith.mulf %323, %329 : vector<2x32xf32>
    %c0_63 = arith.constant 0 : index
    %c0_64 = arith.constant 0 : index
    %331 = vector.load %arg7[%c0_63, %c0_64] : memref<1x32xf32, #tpu.memory_space<vmem>>, vector<1x32xf32>
    %332 = vector.broadcast %331 : vector<1x32xf32> to vector<2x32xf32>
    %333 = arith.mulf %197, %332 : vector<2x32xf32>
    %cst_65 = arith.constant dense<0.000000e+00> : vector<2xf32>
    %334 = vector.multi_reduction <add>, %333, %cst_65 [1] : vector<2x32xf32> to vector<2xf32>
    %335 = vector.shape_cast %334 : vector<2xf32> to vector<2x1xf32>
    %336 = vector.broadcast %0 : f32 to vector<2x1xf32>
    %337 = arith.addf %335, %336 : vector<2x1xf32>
    %338 = vector.broadcast %331 : vector<1x32xf32> to vector<2x32xf32>
    %339 = arith.mulf %216, %338 : vector<2x32xf32>
    %cst_66 = arith.constant dense<0.000000e+00> : vector<2xf32>
    %340 = vector.multi_reduction <add>, %339, %cst_66 [1] : vector<2x32xf32> to vector<2xf32>
    %341 = vector.shape_cast %340 : vector<2xf32> to vector<2x1xf32>
    %342 = vector.broadcast %0 : f32 to vector<2x1xf32>
    %343 = arith.addf %341, %342 : vector<2x1xf32>
    %344 = vector.broadcast %331 : vector<1x32xf32> to vector<2x32xf32>
    %345 = arith.mulf %235, %344 : vector<2x32xf32>
    %cst_67 = arith.constant dense<0.000000e+00> : vector<2xf32>
    %346 = vector.multi_reduction <add>, %345, %cst_67 [1] : vector<2x32xf32> to vector<2xf32>
    %347 = vector.shape_cast %346 : vector<2xf32> to vector<2x1xf32>
    %348 = vector.broadcast %0 : f32 to vector<2x1xf32>
    %349 = arith.addf %347, %348 : vector<2x1xf32>
    %350 = vector.broadcast %331 : vector<1x32xf32> to vector<2x32xf32>
    %351 = arith.mulf %254, %350 : vector<2x32xf32>
    %cst_68 = arith.constant dense<0.000000e+00> : vector<2xf32>
    %352 = vector.multi_reduction <add>, %351, %cst_68 [1] : vector<2x32xf32> to vector<2xf32>
    %353 = vector.shape_cast %352 : vector<2xf32> to vector<2x1xf32>
    %354 = vector.broadcast %0 : f32 to vector<2x1xf32>
    %355 = arith.addf %353, %354 : vector<2x1xf32>
    %356 = vector.broadcast %331 : vector<1x32xf32> to vector<2x32xf32>
    %357 = arith.mulf %273, %356 : vector<2x32xf32>
    %cst_69 = arith.constant dense<0.000000e+00> : vector<2xf32>
    %358 = vector.multi_reduction <add>, %357, %cst_69 [1] : vector<2x32xf32> to vector<2xf32>
    %359 = vector.shape_cast %358 : vector<2xf32> to vector<2x1xf32>
    %360 = vector.broadcast %0 : f32 to vector<2x1xf32>
    %361 = arith.addf %359, %360 : vector<2x1xf32>
    %362 = vector.broadcast %331 : vector<1x32xf32> to vector<2x32xf32>
    %363 = arith.mulf %292, %362 : vector<2x32xf32>
    %cst_70 = arith.constant dense<0.000000e+00> : vector<2xf32>
    %364 = vector.multi_reduction <add>, %363, %cst_70 [1] : vector<2x32xf32> to vector<2xf32>
    %365 = vector.shape_cast %364 : vector<2xf32> to vector<2x1xf32>
    %366 = vector.broadcast %0 : f32 to vector<2x1xf32>
    %367 = arith.addf %365, %366 : vector<2x1xf32>
    %368 = vector.broadcast %331 : vector<1x32xf32> to vector<2x32xf32>
    %369 = arith.mulf %311, %368 : vector<2x32xf32>
    %cst_71 = arith.constant dense<0.000000e+00> : vector<2xf32>
    %370 = vector.multi_reduction <add>, %369, %cst_71 [1] : vector<2x32xf32> to vector<2xf32>
    %371 = vector.shape_cast %370 : vector<2xf32> to vector<2x1xf32>
    %372 = vector.broadcast %0 : f32 to vector<2x1xf32>
    %373 = arith.addf %371, %372 : vector<2x1xf32>
    %374 = vector.broadcast %331 : vector<1x32xf32> to vector<2x32xf32>
    %375 = arith.mulf %330, %374 : vector<2x32xf32>
    %cst_72 = arith.constant dense<0.000000e+00> : vector<2xf32>
    %376 = vector.multi_reduction <add>, %375, %cst_72 [1] : vector<2x32xf32> to vector<2xf32>
    %377 = vector.shape_cast %376 : vector<2xf32> to vector<2x1xf32>
    %378 = vector.broadcast %0 : f32 to vector<2x1xf32>
    %379 = arith.addf %377, %378 : vector<2x1xf32>
    %380 = arith.maximumf %337, %343 : vector<2x1xf32>
    %381 = arith.maximumf %380, %349 : vector<2x1xf32>
    %382 = arith.maximumf %381, %355 : vector<2x1xf32>
    %383 = arith.maximumf %382, %361 : vector<2x1xf32>
    %384 = arith.maximumf %383, %367 : vector<2x1xf32>
    %385 = arith.maximumf %384, %373 : vector<2x1xf32>
    %386 = arith.maximumf %385, %379 : vector<2x1xf32>
    %cst_73 = arith.constant 0.000000e+00 : f32
    %387 = vector.broadcast %cst_73 : f32 to vector<2x1xf32>
    %cst_74 = arith.constant 0.000000e+00 : f32
    %388 = vector.broadcast %cst_74 : f32 to vector<2x32xf32>
    %389 = arith.subf %337, %386 : vector<2x1xf32>
    %390 = math.exp %389 : vector<2x1xf32>
    %391 = arith.addf %387, %390 : vector<2x1xf32>
    %392 = vector.broadcast %390 : vector<2x1xf32> to vector<2x32xf32>
    %393 = arith.mulf %392, %197 : vector<2x32xf32>
    %394 = arith.addf %388, %393 : vector<2x32xf32>
    %395 = arith.subf %343, %386 : vector<2x1xf32>
    %396 = math.exp %395 : vector<2x1xf32>
    %397 = arith.addf %391, %396 : vector<2x1xf32>
    %398 = vector.broadcast %396 : vector<2x1xf32> to vector<2x32xf32>
    %399 = arith.mulf %398, %216 : vector<2x32xf32>
    %400 = arith.addf %394, %399 : vector<2x32xf32>
    %401 = arith.subf %349, %386 : vector<2x1xf32>
    %402 = math.exp %401 : vector<2x1xf32>
    %403 = arith.addf %397, %402 : vector<2x1xf32>
    %404 = vector.broadcast %402 : vector<2x1xf32> to vector<2x32xf32>
    %405 = arith.mulf %404, %235 : vector<2x32xf32>
    %406 = arith.addf %400, %405 : vector<2x32xf32>
    %407 = arith.subf %355, %386 : vector<2x1xf32>
    %408 = math.exp %407 : vector<2x1xf32>
    %409 = arith.addf %403, %408 : vector<2x1xf32>
    %410 = vector.broadcast %408 : vector<2x1xf32> to vector<2x32xf32>
    %411 = arith.mulf %410, %254 : vector<2x32xf32>
    %412 = arith.addf %406, %411 : vector<2x32xf32>
    %413 = arith.subf %361, %386 : vector<2x1xf32>
    %414 = math.exp %413 : vector<2x1xf32>
    %415 = arith.addf %409, %414 : vector<2x1xf32>
    %416 = vector.broadcast %414 : vector<2x1xf32> to vector<2x32xf32>
    %417 = arith.mulf %416, %273 : vector<2x32xf32>
    %418 = arith.addf %412, %417 : vector<2x32xf32>
    %419 = arith.subf %367, %386 : vector<2x1xf32>
    %420 = math.exp %419 : vector<2x1xf32>
    %421 = arith.addf %415, %420 : vector<2x1xf32>
    %422 = vector.broadcast %420 : vector<2x1xf32> to vector<2x32xf32>
    %423 = arith.mulf %422, %292 : vector<2x32xf32>
    %424 = arith.addf %418, %423 : vector<2x32xf32>
    %425 = arith.subf %373, %386 : vector<2x1xf32>
    %426 = math.exp %425 : vector<2x1xf32>
    %427 = arith.addf %421, %426 : vector<2x1xf32>
    %428 = vector.broadcast %426 : vector<2x1xf32> to vector<2x32xf32>
    %429 = arith.mulf %428, %311 : vector<2x32xf32>
    %430 = arith.addf %424, %429 : vector<2x32xf32>
    %431 = arith.subf %379, %386 : vector<2x1xf32>
    %432 = math.exp %431 : vector<2x1xf32>
    %433 = arith.addf %427, %432 : vector<2x1xf32>
    %434 = vector.broadcast %432 : vector<2x1xf32> to vector<2x32xf32>
    %435 = arith.mulf %434, %330 : vector<2x32xf32>
    %436 = arith.addf %430, %435 : vector<2x32xf32>
    %437 = vector.broadcast %433 : vector<2x1xf32> to vector<2x32xf32>
    %438 = arith.divf %436, %437 : vector<2x32xf32>
    %c0_75 = arith.constant 0 : index
    %c0_76 = arith.constant 0 : index
    %439 = vector.load %arg9[%c0_75, %c0_76] : memref<32x5xf32, #tpu.memory_space<vmem>>, vector<32x5xf32>
    %cst_77 = arith.constant dense<0.000000e+00> : vector<2x5xf32>
    %440 = tpu.matmul %438, %439, %cst_77 {dimension_numbers = #tpu.dot_dimension_numbers<[1], [0], [0], [1], [0, 0, 1, 1], [], []>} : vector<2x32xf32>, vector<32x5xf32>, vector<2x5xf32> -> vector<2x5xf32>
    %c0_78 = arith.constant 0 : index
    %c0_79 = arith.constant 0 : index
    %441 = vector.load %arg10[%c0_78, %c0_79] : memref<1x5xf32, #tpu.memory_space<vmem>>, vector<1x5xf32>
    %442 = vector.broadcast %441 : vector<1x5xf32> to vector<2x5xf32>
    %443 = arith.addf %440, %442 : vector<2x5xf32>
    %c0_80 = arith.constant 0 : index
    %c0_81 = arith.constant 0 : index
    %444 = vector.load %arg11[%c0_80, %c0_81] : memref<2x5xf32, #tpu.memory_space<vmem>>, vector<2x5xf32>
    tpu.vector_store %arg11[%c0_80, %c0_81], %443 {strides = array<i32>} : memref<2x5xf32, #tpu.memory_space<vmem>>, vector<2x5xf32>,
    return
  }
}

</mosaic_0001>

<bundles_post_ra>
// kernel: tpu_custom_call.1
= control target key start
LH: loop header
LB: loop body
LE: loop exit
PB: predicated region body
PF: predicated region fallthrough
CT: control target
= control target key end

     0   :  { %17 = vsyncpa [#allocation5], 0  ;;  %s3472_s0 = inlined_call_operand.vmem [shape: f32[16,4], index: 0, kind: input, shape index: {}]   ;;  %s3473_s1 = inlined_call_operand.hbm [shape: f32[4,128], index: 1, kind: input, shape index: {}]   ;;  %s3474_s2 = inlined_call_operand.vmem [shape: f32[32,128], index: 2, kind: input, shape index: {}]   ;;  %s3475_s3 = inlined_call_operand.vmem [shape: f32[1,128], index: 3, kind: input, shape index: {}]   ;;  %s3476_s4 = inlined_call_operand.vmem [shape: f32[32,128], index: 4, kind: input, shape index: {}]   ;;  %s3477_s5 = inlined_call_operand.hbm [shape: f32[32,128], index: 5, kind: input, shape index: {}]   ;;  %s3478_s6 = inlined_call_operand.vmem [shape: f32[1,128], index: 6, kind: input, shape index: {}]   ;;  %s3479_s7 = inlined_call_operand.vmem [shape: f32[1,32], index: 7, kind: input, shape index: {}]   ;;  %s3480_s8 = inlined_call_operand.<no memory space> [shape: f32[1,1], index: 8, kind: input, shape index: {}]   ;;  %s3481_s9 = inlined_call_operand.vmem [shape: f32[32,5], index: 9, kind: input, shape index: {}]   ;;  %s3482_s10 = inlined_call_operand.vmem [shape: f32[1,5], index: 10, kind: input, shape index: {}]   ;;  %s3483_s11 = inlined_call_operand.hbm [shape: f32[2,5], index: 11, kind: output, shape index: {}]  }
   0x1   :  { %18 = vsyncpa [#allocation8], 0 }
   0x2   :  { %19 = vsyncpa [#allocation6], 0  ;;  %s3001_s17 = smov [#allocation4]   ;;  %s3002_s19 = smov [#allocation7]  }
   0x3   :  { %s28_s18 = sshll.u32 %s3001_s17, 4  ;;  %s43_s20 = sshll.u32 %s3002_s19, 4  ;;  %s29_s18 = int_to_ptr.vmem [resolvable:$true] %s28_s18  ;;  %s3072_s20 = int_to_ptr.vmem [resolvable:$true] %s43_s20 }
   0x4   :  { %s2929_s23 = scalar_lea.hbm %s3473_s1, 64 }
   0x5   :  { %p2930_p0 = scmp.ne.s32.totalorder %s3473_s1, %s2929_s23  ;;  %p2933_p1 = scmp.lt.u32.totalorder %s2929_s23, %s3473_s1 }
   0x7   :  { %p2935_p2 = pnand %p2933_p1, %p2930_p0 }
   0x9   :  { %2938 = shalt.err (!%p2935_p2)
}
   0xa   :  { %s2939_s28 = scalar_lea.vmem %s29_s18, 64  ;;  %p2944_p4 = scmp.lt.s32.totalorder %s29_s18, %s29_s18 }
   0xb   :  { %p2940_p3 = scmp.ne.s32.totalorder %s29_s18, %s2939_s28  ;;  %p2945_p5 = scmp.lt.s32.totalorder %s2939_s28, %s2939_s28 }
   0xd   :  { %p2946_p6 = por %p2945_p5, %p2944_p4 }
   0xf   :  { %p2947_p7 = pnand %p2946_p6, %p2940_p3 }
  0x11   :  { %2950 = shalt.err (!%p2947_p7)
}
  0x12   :  { %31 = dma.hbm_to_vmem [thread:$0]  %s3473_s1, 64, %s29_s18, [#allocation5]  }
  0x13   :  { %s2951_s14 = scalar_lea.hbm %s3477_s5, 512 }
  0x14   :  { %p2952_p8 = scmp.ne.s32.totalorder %s3477_s5, %s2951_s14  ;;  %p2955_p9 = scmp.lt.u32.totalorder %s2951_s14, %s3477_s5 }
  0x16   :  { %p2957_p10 = pnand %p2955_p9, %p2952_p8 }
  0x18   :  { %2960 = shalt.err (!%p2957_p10)
}
  0x19   :  { %s2961_s21 = scalar_lea.vmem %s3072_s20, 512  ;;  %p2966_p12 = scmp.lt.s32.totalorder %s3072_s20, %s3072_s20 }
  0x1a   :  { %p2962_p11 = scmp.ne.s32.totalorder %s3072_s20, %s2961_s21  ;;  %p2967_p13 = scmp.lt.s32.totalorder %s2961_s21, %s2961_s21 }
  0x1c   :  { %p2968_p0 = por %p2967_p13, %p2966_p12 }
  0x1e   :  { %p2969_p1 = pnand %p2968_p0, %p2962_p11 }
  0x20   :  { %2972 = shalt.err (!%p2969_p1)
}
  0x21   :  { %s3003_s1 = smov 128   ;;  %s3004_s18 = smov 8  }
  0x22   :  { %49 = dma.hbm_to_vmem [thread:$0]  %s3477_s5, 512, %s3072_s20, [#allocation8], %s3003_s1, %s3003_s1, %s3004_s18  }
  0x23   :  { %2995 = dma.done.wait [#allocation5], 64  }
  0x24   :  { %2996 = vsyncadd [#allocation5], 4294967232 }
  0x25   :  { %2997 = dma.done.wait [#allocation8], 512  }
  0x26   :  { %2998 = vsyncadd [#allocation8], 4294966784  ;;  %v3005_v0 = vmov 0.0|0.0   ;;  %vm3006_vm0 = vmmov 0   ;;  %v3007_v1 = vmov 0.0   ;;  %vm88_vm1 = vcmask 1043456  }
  0x27   :  { %2660 = vmatprep.subr.bf16.mxu1 %v3005_v0  ;;  %2470 = vmatprep.mubr.msk.f32.mxu1 %vm3006_vm0, %v3007_v1  ;;  %vm81_vm2 = vcmask 31744   ;;  %v68_v2 = vld [vmem:[%s3474_s2] sm:$0xff]  ;;  %v69_v3 = vld [vmem:[%s3474_s2 + $0x8] sm:$0xff]  ;;  %v67_v4 = vld [vmem:[#allocation4] sm:$0xf]  ;;  %s3008_s15 = smov 32  }
  0x28   :  { %v3112_v5 = vpack.c.bf16 %v69_v3, %v68_v2  ;;  %2457 = vmatprep.subr.msk.mxu0 %vm88_vm1, %v67_v4  ;;  %v73_v6 = vld [vmem:[%s3472_s0] sm:$0xff]  ;;  %v74_v7 = vld [vmem:[%s3472_s0 + $0x8] sm:$0xff]  ;;  %v70_v8 = vld [vmem:[%s3474_s2 + $0x10] sm:$0xff]  ;;  %vm270_vm3 = vcmask 254976   ;;  %vm167_vm4 = vcmask 261120   ;;  %vm379_vm5 = vcmask 257026  }
  0x29   :  { %2458 = vmatpush3.msk.msra.mxu0 %vm88_vm1, %v67_v4  ;;  %2459 = vmatprep.mubr.msk.f32.mxu0 %vm81_vm2, %v73_v6  ;;  %v71_v9 = vld [vmem:[%s3474_s2 + $0x18] sm:$0xff]  ;;  %v2323_v11 = vld [vmem:[%s3475_s3] ss:$0 sm:$0xff]  ;;  %s3009_s3 = smov 64   ;;  %vm603_vm6 = vcmask 261126   ;;  %vm491_vm7 = vcmask 259076  }
  0x2a   :  { %2662 = vmatpush3.bf16.msra.mxu1 %v3112_v5  ;;  %2460 = vmatmul.mubr.msk.f32.vlgmr.msra.gmra.mrb[0].mxu0 %vm81_vm2, %v74_v7  ;;  %v3127_v10 = vpack.c.bf16 %v71_v9, %v70_v8  ;;  %s3011_s14 = smov [#allocation9]   ;;  %vm2305_vm8 = vcmask 33792  }
  0x2b   :  { %2663 = vmatprep.subr.bf16.mxu1 %v3005_v0  ;;  %2666 = vmatprep.subr.bf16.mxu0 %v3005_v0  ;;  %s2313_s0 = sshll.u32 %s3011_s14, 4  ;;  %s2314_s0 = int_to_ptr.vmem [resolvable:$true] %s2313_s0 }
  0x2c   :  { %2668 = vmatpush3.bf16.msra.mxu0 %v3112_v5  ;;  %2481 = vmatprep.mubr.msk.f32.mxu0 %vm3006_vm0, %v3007_v1  ;;  %s2973_s2 = scalar_lea.vmem %s2314_s0, 32  ;;  %p2978_p3 = scmp.lt.s32.totalorder %s2314_s0, %s2314_s0 }
  0x2d   :  { %2669 = vmatprep.subr.bf16.mxu0 %v3005_v0  ;;  %p2974_p2 = scmp.ne.s32.totalorder %s2314_s0, %s2973_s2  ;;  %p2979_p4 = scmp.lt.s32.totalorder %s2973_s2, %s2973_s2 }
  0x2e   :  { %2665 = vmatpush3.bf16.msra.mxu1 %v3127_v10 }
  0x2f   :  { %2672 = vmatprep.subr.bf16.mxu1 %v3005_v0  ;;  %p2980_p5 = por %p2979_p4, %p2978_p3 }
  0x30   :  { %2671 = vmatpush3.bf16.msra.mxu0 %v3127_v10 }
  0x31   :  { %2471 = vmatmul.mubr.f32.vlgmr.msra.gmra.mrb[0].mxu1 %v3007_v1  ;;  %2678 = vmatprep.subr.bf16.mxu0 %v3005_v0  ;;  %p2981_p6 = pnand %p2980_p5, %p2974_p2 }
  0x32   :  { %2674 = vmatpush3.bf16.msra.mxu1 %v3112_v5  ;;  %2492 = vmatprep.mubr.msk.f32.mxu1 %vm3006_vm0, %v3007_v1 }
  0x33   :  { %2675 = vmatprep.subr.bf16.mxu1 %v3005_v0 }
  0x36   :  { %2677 = vmatpush3.bf16.msra.mxu1 %v3127_v10 }
  0x37   :  { %2684 = vmatprep.subr.bf16.mxu1 %v3005_v0 }
  0xfd   :  { %v2461_v12 = vpop.f32.mrb[0].mxu0 }
  0xfe   :  { %v3149_v13 = vadd.f32 %v2461_v12, %v2323_v11  ;;  %v158_v14 = vpop.f32.mrb[1].mxu0 }
  0xff   :  { %v3151_v15 = vadd.f32 %v2323_v11, %v158_v14 }
 0x104   :  { %v237_v16 = vpop.f32.mrb[0].mxu1 }
 0x105   :  { %v241_v17 = vadd.f32 %v237_v16, %v3151_v15  ;;  %v2472_v18 = vpop.f32.mrb[1].mxu1 }
 0x107   :  { %2783 = vtanh.f32 %v241_v17  ;;  %v2327_v20 = vmul.f32 -1.442695, %v241_v17 }
 0x109   :  { %2785 = vpow2.f32 %v2327_v20 }
 0x111   :  { %v2784_v19 = vpop.eup %2783 }
 0x112   :  { %251 = vrot.lane.b32.xlu0 %v2784_v19, %s3008_s15 }
 0x113   :  { %v2786_v21 = vpop.eup %2785 }
 0x114   :  { %v245_v22 = vadd.f32 1.0, %v2786_v21 }
 0x116   :  { %2787 = vrcp.f32 %v245_v22 }
 0x120   :  { %v2788_v23 = vpop.eup %2787 }
 0x121   :  { %v249_v26 = vmul.f32 0.0, %v2788_v23 }
 0x184   :  { %v252_v24 = vpop.permute.xlu0 %251 }
 0x185   :  { %v254_v25 = vmul.f32 %v2788_v23, %v252_v24 }
 0x187   :  { %256 = vrot.lane.b32.xlu0 %v254_v25, %s3008_s15 }
 0x1f9   :  { %v257_v27 = vpop.permute.xlu0 %256 }
 0x1fa   :  { %v259_v28 = vadd.f32 %v257_v27, %v249_v26 }
 0x1fc   :  { %2789 = vtanh.f32 %v259_v28  ;;  %v356_v44 = vrot.slane %v259_v28, 6 }
 0x206   :  { %v2790_v29 = vpop.eup %2789 }
 0x207   :  { %262 = vrot.lane.b32.xlu1 %v2790_v29, %s3008_s15 }
 0x279   :  { %v263_v30 = vpop.permute.xlu1 %262 }
 0x27a   :  { %v265_v31 = vmul.f32 %v2788_v23, %v263_v30 }
 0x27c   :  { %267 = vrot.lane.b32.xlu1 %v265_v31, %s3009_s3 }
 0x2ee   :  { %v268_v32 = vpop.permute.xlu1 %267 }
 0x2ef   :  { %271 = vst.msk [vmem:[#allocation2] sm:$0x3] %vm270_vm3, %v268_v32  ;;  %2482 = vmatmul.mubr.msk.f32.vlgmr.msra.gmra.mrb[2].mxu0 %vm167_vm4, %v268_v32 }
 0x2f0   :  { %2680 = vmatpush3.bf16.msra.mxu0 %v3112_v5  ;;  %2503 = vmatprep.mubr.msk.f32.mxu0 %vm3006_vm0, %v3007_v1 }
 0x2f1   :  { %2681 = vmatprep.subr.bf16.mxu0 %v3005_v0 }
 0x2f4   :  { %2683 = vmatpush3.bf16.msra.mxu0 %v3127_v10 }
 0x2f5   :  { %2690 = vmatprep.subr.bf16.mxu0 %v3005_v0 }
 0x3c2   :  { %v340_v33 = vpop.f32.mrb[2].mxu0 }
 0x3c3   :  { %v345_v34 = vrot.slane %v340_v33, 6  ;;  %v2483_v35 = vpop.f32.mrb[3].mxu0 }
 0x3c5   :  { %v347_v36 = vadd.f32 %v345_v34, %v3151_v15 }
 0x3c7   :  { %2791 = vtanh.f32 %v347_v36  ;;  %v2329_v38 = vmul.f32 -1.442695, %v347_v36 }
 0x3c9   :  { %2793 = vpow2.f32 %v2329_v38 }
 0x3d1   :  { %v2792_v37 = vpop.eup %2791 }
 0x3d2   :  { %360 = vrot.lane.b32.xlu0 %v2792_v37, %s3008_s15 }
 0x3d3   :  { %v2794_v39 = vpop.eup %2793 }
 0x3d4   :  { %v351_v40 = vadd.f32 1.0, %v2794_v39 }
 0x3d6   :  { %2795 = vrcp.f32 %v351_v40 }
 0x3e0   :  { %v2796_v41 = vpop.eup %2795 }
 0x3e1   :  { %v358_v45 = vmul.f32 %v2796_v41, %v356_v44 }
 0x444   :  { %v361_v42 = vpop.permute.xlu0 %360 }
 0x445   :  { %v363_v43 = vmul.f32 %v2796_v41, %v361_v42 }
 0x447   :  { %365 = vrot.lane.b32.xlu1 %v363_v43, %s3008_s15 }
 0x4b9   :  { %v366_v46 = vpop.permute.xlu1 %365 }
 0x4ba   :  { %v368_v47 = vadd.f32 %v366_v46, %v358_v45 }
 0x4bc   :  { %2797 = vtanh.f32 %v368_v47  ;;  %v468_v2 = vrot.slane %v368_v47, 6 }
 0x4c6   :  { %v2798_v48 = vpop.eup %2797 }
 0x4c7   :  { %371 = vrot.lane.b32.xlu0 %v2798_v48, %s3008_s15 }
 0x539   :  { %v372_v49 = vpop.permute.xlu0 %371 }
 0x53a   :  { %v3170_v50 = vmul.f32 %v2796_v41, %v372_v49 }
 0x53c   :  { %v381_v51 = vrot.slane %v3170_v50, 2 }
 0x53e   :  { %382 = vrot.lane.b32.xlu1 %v381_v51, %s3009_s3 }
 0x5b0   :  { %v383_v52 = vpop.permute.xlu1 %382 }
 0x5b1   :  { %2493 = vmatmul.mubr.msk.f32.vlgmr.msra.gmra.mrb[2].mxu1 %vm167_vm4, %v383_v52 }
 0x5b2   :  { %2686 = vmatpush3.bf16.msra.mxu1 %v3112_v5  ;;  %2514 = vmatprep.mubr.msk.f32.mxu1 %vm3006_vm0, %v3007_v1 }
 0x5b3   :  { %2687 = vmatprep.subr.bf16.mxu1 %v3005_v0 }
 0x5b6   :  { %2689 = vmatpush3.bf16.msra.mxu1 %v3127_v10 }
 0x5b7   :  { %2696 = vmatprep.subr.bf16.mxu1 %v3005_v0 }
 0x684   :  { %v452_v53 = vpop.f32.mrb[2].mxu1 }
 0x685   :  { %v457_v54 = vrot.slane %v452_v53, 4  ;;  %v2494_v55 = vpop.f32.mrb[3].mxu1 }
 0x687   :  { %v459_v56 = vadd.f32 %v457_v54, %v3151_v15 }
 0x689   :  { %2799 = vtanh.f32 %v459_v56  ;;  %v2331_v58 = vmul.f32 -1.442695, %v459_v56 }
 0x68b   :  { %2801 = vpow2.f32 %v2331_v58 }
 0x693   :  { %v2800_v57 = vpop.eup %2799 }
 0x694   :  { %472 = vrot.lane.b32.xlu0 %v2800_v57, %s3008_s15 }
 0x695   :  { %v2802_v59 = vpop.eup %2801 }
 0x696   :  { %v463_v60 = vadd.f32 1.0, %v2802_v59 }
 0x698   :  { %2803 = vrcp.f32 %v463_v60 }
 0x6a2   :  { %v2804_v61 = vpop.eup %2803 }
 0x6a3   :  { %v470_v3 = vmul.f32 %v2804_v61, %v468_v2 }
 0x706   :  { %v473_v62 = vpop.permute.xlu0 %472 }
 0x707   :  { %v475_v63 = vmul.f32 %v2804_v61, %v473_v62 }
 0x709   :  { %477 = vrot.lane.b32.xlu1 %v475_v63, %s3008_s15 }
 0x77b   :  { %v478_v4 = vpop.permute.xlu1 %477 }
 0x77c   :  { %v480_v6 = vadd.f32 %v478_v4, %v470_v3 }
 0x77e   :  { %2805 = vtanh.f32 %v480_v6  ;;  %v580_v26 = vrot.slane %v480_v6, 6 }
 0x788   :  { %v2806_v7 = vpop.eup %2805 }
 0x789   :  { %483 = vrot.lane.b32.xlu0 %v2806_v7, %s3008_s15 }
 0x7fb   :  { %v484_v8 = vpop.permute.xlu0 %483 }
 0x7fc   :  { %v3185_v9 = vmul.f32 %v2804_v61, %v484_v8 }
 0x7fe   :  { %v493_v11 = vrot.slane %v3185_v9, 4 }
 0x800   :  { %494 = vrot.lane.b32.xlu1 %v493_v11, %s3009_s3 }
 0x872   :  { %v495_v12 = vpop.permute.xlu1 %494 }
 0x873   :  { %2504 = vmatmul.mubr.msk.f32.vlgmr.msra.gmra.mrb[4].mxu0 %vm167_vm4, %v495_v12 }
 0x874   :  { %2692 = vmatpush3.bf16.msra.mxu0 %v3112_v5  ;;  %2525 = vmatprep.mubr.msk.f32.mxu0 %vm3006_vm0, %v3007_v1 }
 0x875   :  { %2693 = vmatprep.subr.bf16.mxu0 %v3005_v0 }
 0x878   :  { %2695 = vmatpush3.bf16.msra.mxu0 %v3127_v10 }
 0x879   :  { %2702 = vmatprep.subr.bf16.mxu0 %v3005_v0 }
 0x946   :  { %v564_v14 = vpop.f32.mrb[4].mxu0 }
 0x947   :  { %v569_v16 = vrot.slane %v564_v14, 2  ;;  %v2505_v17 = vpop.f32.mrb[5].mxu0 }
 0x949   :  { %v571_v18 = vadd.f32 %v569_v16, %v3151_v15 }
 0x94b   :  { %2807 = vtanh.f32 %v571_v18  ;;  %v2333_v20 = vmul.f32 -1.442695, %v571_v18 }
 0x94d   :  { %2809 = vpow2.f32 %v2333_v20 }
 0x955   :  { %v2808_v19 = vpop.eup %2807 }
 0x956   :  { %584 = vrot.lane.b32.xlu0 %v2808_v19, %s3008_s15 }
 0x957   :  { %v2810_v21 = vpop.eup %2809 }
 0x958   :  { %v575_v22 = vadd.f32 1.0, %v2810_v21 }
 0x95a   :  { %2811 = vrcp.f32 %v575_v22 }
 0x964   :  { %v2812_v23 = vpop.eup %2811 }
 0x965   :  { %v582_v27 = vmul.f32 %v2812_v23, %v580_v26 }
 0x9c8   :  { %v585_v24 = vpop.permute.xlu0 %584 }
 0x9c9   :  { %v587_v25 = vmul.f32 %v2812_v23, %v585_v24 }
 0x9cb   :  { %589 = vrot.lane.b32.xlu1 %v587_v25, %s3008_s15 }
 0xa3d   :  { %v590_v28 = vpop.permute.xlu1 %589 }
 0xa3e   :  { %v592_v29 = vadd.f32 %v590_v28, %v582_v27 }
 0xa40   :  { %2813 = vtanh.f32 %v592_v29  ;;  %v689_v44 = vrot.slane %v592_v29, 6 }
 0xa4a   :  { %v2814_v15 = vpop.eup %2813 }
 0xa4b   :  { %595 = vrot.lane.b32.xlu0 %v2814_v15, %s3008_s15 }
 0xabd   :  { %v596_v30 = vpop.permute.xlu0 %595 }
 0xabe   :  { %v3200_v31 = vmul.f32 %v2812_v23, %v596_v30 }
 0xac0   :  { %v605_v32 = vrot.slane %v3200_v31, 6 }
 0xac2   :  { %606 = vrot.lane.b32.xlu1 %v605_v32, %s3009_s3 }
 0xb34   :  { %v607_v33 = vpop.permute.xlu1 %606 }
 0xb35   :  { %2515 = vmatmul.mubr.msk.f32.vlgmr.msra.gmra.mrb[4].mxu1 %vm167_vm4, %v607_v33 }
 0xb36   :  { %2698 = vmatpush3.bf16.msra.mxu1 %v3112_v5  ;;  %2536 = vmatprep.mubr.msk.f32.mxu1 %vm3006_vm0, %v3007_v1 }
 0xb37   :  { %2699 = vmatprep.subr.bf16.mxu1 %v3005_v0 }
 0xb3a   :  { %2701 = vmatpush3.bf16.msra.mxu1 %v3127_v10 }
 0xc08   :  { %v676_v34 = vpop.f32.mrb[4].mxu1 }
 0xc09   :  { %v680_v35 = vadd.f32 %v676_v34, %v3149_v13  ;;  %v2516_v36 = vpop.f32.mrb[5].mxu1 }
 0xc0b   :  { %2815 = vtanh.f32 %v680_v35  ;;  %v2335_v38 = vmul.f32 -1.442695, %v680_v35 }
 0xc0d   :  { %2817 = vpow2.f32 %v2335_v38 }
 0xc15   :  { %v2816_v37 = vpop.eup %2815 }
 0xc16   :  { %693 = vrot.lane.b32.xlu0 %v2816_v37, %s3008_s15 }
 0xc17   :  { %v2818_v39 = vpop.eup %2817 }
 0xc18   :  { %v684_v40 = vadd.f32 1.0, %v2818_v39 }
 0xc1a   :  { %2819 = vrcp.f32 %v684_v40 }
 0xc24   :  { %v2820_v41 = vpop.eup %2819 }
 0xc25   :  { %v691_v45 = vmul.f32 %v2820_v41, %v689_v44 }
 0xc88   :  { %v694_v42 = vpop.permute.xlu0 %693 }
 0xc89   :  { %v696_v43 = vmul.f32 %v2820_v41, %v694_v42 }
 0xc8b   :  { %698 = vrot.lane.b32.xlu1 %v696_v43, %s3008_s15 }
 0xcfd   :  { %v699_v46 = vpop.permute.xlu1 %698 }
 0xcfe   :  { %v701_v47 = vadd.f32 %v699_v46, %v691_v45 }
 0xd00   :  { %2821 = vtanh.f32 %v701_v47 }
 0xd0a   :  { %v2822_v48 = vpop.eup %2821 }
 0xd0b   :  { %704 = vrot.lane.b32.xlu0 %v2822_v48, %s3008_s15 }
 0xd7d   :  { %v705_v49 = vpop.permute.xlu0 %704 }
 0xd7e   :  { %v707_v51 = vmul.f32 %v2820_v41, %v705_v49 }
 0xd80   :  { %709 = vrot.lane.b32.xlu1 %v707_v51, %s3009_s3 }
 0xdf2   :  { %v710_v52 = vpop.permute.xlu1 %709 }
 0xdf3   :  { %712 = vst.msk [vmem:[#allocation2 + $0x8] sm:$0x3] %vm270_vm3, %v710_v52  ;;  %2526 = vmatmul.mubr.msk.f32.vlgmr.msra.gmra.mrb[6].mxu0 %vm167_vm4, %v710_v52  ;;  %v1044_v52 = vld [vmem:[%s3476_s4 + $0x8] sm:$0xff] }
 0xdf4   :  { %2704 = vmatpush3.bf16.msra.mxu0 %v3112_v5  ;;  %2547 = vmatprep.mubr.msk.f32.mxu0 %vm3006_vm0, %v3007_v1 }
 0xdf5   :  { %2705 = vmatprep.subr.bf16.mxu0 %v3005_v0 }
 0xdf8   :  { %2707 = vmatpush3.bf16.msra.mxu0 %v3127_v10  ;;  %v797_v10 = vrot.slane %v701_v47, 6 }
 0xdf9   :  { %2716 = vmatprep.subr.bf16.mxu0 %v3005_v0 }
 0xec6   :  { %v781_v53 = vpop.f32.mrb[6].mxu0 }
 0xec7   :  { %v786_v54 = vrot.slane %v781_v53, 6  ;;  %v2527_v55 = vpop.f32.mrb[7].mxu0 }
 0xec8   :  { %v1048_v55 = vld [vmem:[#allocation7 + $0x8] sm:$0xff] }
 0xec9   :  { %v788_v56 = vadd.f32 %v786_v54, %v3149_v13  ;;  %v1047_v54 = vld [vmem:[#allocation7] sm:$0xff] }
 0xecb   :  { %2823 = vtanh.f32 %v788_v56  ;;  %v2337_v58 = vmul.f32 -1.442695, %v788_v56  ;;  %v1045_v56 = vld [vmem:[%s3476_s4 + $0x10] sm:$0xff] }
 0xecd   :  { %2825 = vpow2.f32 %v2337_v58  ;;  %v1049_v58 = vld [vmem:[#allocation7 + $0x10] sm:$0xff] }
 0xed5   :  { %v2824_v57 = vpop.eup %2823 }
 0xed6   :  { %801 = vrot.lane.b32.xlu0 %v2824_v57, %s3008_s15  ;;  %v1046_v57 = vld [vmem:[%s3476_s4 + $0x18] sm:$0xff] }
 0xed7   :  { %v2826_v5 = vpop.eup %2825 }
 0xed8   :  { %v792_v59 = vadd.f32 1.0, %v2826_v5  ;;  %v1050_v5 = vld [vmem:[#allocation7 + $0x18] sm:$0xff] }
 0xeda   :  { %2827 = vrcp.f32 %v792_v59  ;;  %v2712_v59 = vpack.c.bf16 %v1046_v57, %v1045_v56 }
 0xee4   :  { %v2828_v60 = vpop.eup %2827 }
 0xee5   :  { %v799_v63 = vmul.f32 %v2828_v60, %v797_v10 }
 0xf48   :  { %v802_v61 = vpop.permute.xlu0 %801 }
 0xf49   :  { %v804_v62 = vmul.f32 %v2828_v60, %v802_v61 }
 0xf4b   :  { %806 = vrot.lane.b32.xlu1 %v804_v62, %s3008_s15 }
 0xfbd   :  { %v807_v2 = vpop.permute.xlu1 %806 }
 0xfbe   :  { %v809_v3 = vadd.f32 %v807_v2, %v799_v63 }
 0xfc0   :  { %2829 = vtanh.f32 %v809_v3  ;;  %v908_v25 = vrot.slane %v809_v3, 6 }
 0xfca   :  { %v2830_v4 = vpop.eup %2829 }
 0xfcb   :  { %812 = vrot.lane.b32.xlu0 %v2830_v4, %s3008_s15 }
0x103d   :  { %v813_v6 = vpop.permute.xlu0 %812 }
0x103e   :  { %v3227_v7 = vmul.f32 %v2828_v60, %v813_v6  ;;  %v3271_v60 = vpack.c.bf16 %v1050_v5, %v1049_v58 }
0x1040   :  { %v821_v8 = vrot.slane %v3227_v7, 2 }
0x1042   :  { %822 = vrot.lane.b32.xlu1 %v821_v8, %s3009_s3  ;;  %v2342_v8 = vld [vmem:[%s3478_s6] ss:$0 sm:$0xff] }
0x10b4   :  { %v823_v11 = vpop.permute.xlu1 %822 }
0x10b5   :  { %2537 = vmatmul.mubr.msk.f32.vlgmr.msra.gmra.mrb[6].mxu1 %vm167_vm4, %v823_v11 }
0x1188   :  { %v892_v12 = vpop.f32.mrb[6].mxu1 }
0x1189   :  { %v897_v14 = vrot.slane %v892_v12, 4  ;;  %v2538_v16 = vpop.f32.mrb[7].mxu1 }
0x118b   :  { %v899_v17 = vadd.f32 %v897_v14, %v3149_v13 }
0x118d   :  { %2831 = vtanh.f32 %v899_v17  ;;  %v2339_v19 = vmul.f32 -1.442695, %v899_v17 }
0x118f   :  { %2833 = vpow2.f32 %v2339_v19 }
0x1197   :  { %v2832_v18 = vpop.eup %2831 }
0x1198   :  { %912 = vrot.lane.b32.xlu0 %v2832_v18, %s3008_s15 }
0x1199   :  { %v2834_v20 = vpop.eup %2833 }
0x119a   :  { %v903_v21 = vadd.f32 1.0, %v2834_v20 }
0x119c   :  { %2835 = vrcp.f32 %v903_v21 }
0x11a6   :  { %v2836_v22 = vpop.eup %2835 }
0x11a7   :  { %v910_v26 = vmul.f32 %v2836_v22, %v908_v25 }
0x120a   :  { %v913_v23 = vpop.permute.xlu0 %912 }
0x120b   :  { %v915_v24 = vmul.f32 %v2836_v22, %v913_v23 }
0x120d   :  { %917 = vrot.lane.b32.xlu1 %v915_v24, %s3008_s15 }
0x127f   :  { %v918_v27 = vpop.permute.xlu1 %917 }
0x1280   :  { %v920_v28 = vadd.f32 %v918_v27, %v910_v26 }
0x1282   :  { %2837 = vtanh.f32 %v920_v28 }
0x128c   :  { %v2838_v29 = vpop.eup %2837 }
0x128d   :  { %923 = vrot.lane.b32.xlu0 %v2838_v29, %s3008_s15 }
0x12ff   :  { %v924_v15 = vpop.permute.xlu0 %923 }
0x1300   :  { %v926_v30 = vmul.f32 %v2836_v22, %v924_v15 }
0x1302   :  { %v932_v32 = vrot.slane %v926_v30, 4 }
0x1304   :  { %933 = vrot.lane.b32.xlu1 %v932_v32, %s3009_s3 }
0x1376   :  { %v934_v33 = vpop.permute.xlu1 %933 }
0x1377   :  { %2548 = vmatmul.mubr.msk.f32.vlgmr.msra.gmra.mrb[8].mxu0 %vm167_vm4, %v934_v33 }
0x1378   :  { %2569 = vmatprep.mubr.msk.f32.mxu0 %vm3006_vm0, %v3007_v1 }
0x144a   :  { %v1003_v34 = vpop.f32.mrb[8].mxu0 }
0x144b   :  { %v1008_v35 = vrot.slane %v1003_v34, 2  ;;  %v2549_v36 = vpop.f32.mrb[9].mxu0 }
0x144d   :  { %v1010_v37 = vadd.f32 %v1008_v35, %v3149_v13  ;;  %v1019_v13 = vrot.slane %v920_v28, 6 }
0x144f   :  { %2839 = vtanh.f32 %v1010_v37  ;;  %v2341_v39 = vmul.f32 -1.442695, %v1010_v37 }
0x1451   :  { %2841 = vpow2.f32 %v2341_v39 }
0x1459   :  { %v2840_v38 = vpop.eup %2839 }
0x145a   :  { %1023 = vrot.lane.b32.xlu0 %v2840_v38, %s3008_s15 }
0x145b   :  { %v2842_v40 = vpop.eup %2841 }
0x145c   :  { %v1014_v41 = vadd.f32 1.0, %v2842_v40 }
0x145e   :  { %2843 = vrcp.f32 %v1014_v41 }
0x1468   :  { %v2844_v42 = vpop.eup %2843 }
0x1469   :  { %v1021_v45 = vmul.f32 %v2844_v42, %v1019_v13 }
0x14cc   :  { %v1024_v43 = vpop.permute.xlu0 %1023 }
0x14cd   :  { %v1026_v44 = vmul.f32 %v2844_v42, %v1024_v43 }
0x14cf   :  { %1028 = vrot.lane.b32.xlu1 %v1026_v44, %s3008_s15 }
0x14d3   :  { %376 = vrot.lane.b32.xlu1 %v3170_v50, %s3009_s3 }
0x14d7   :  { %600 = vrot.lane.b32.xlu1 %v3200_v31, %s3009_s3  ;;  %v1043_v31 = vld [vmem:[%s3476_s4] sm:$0xff] }
0x14d8   :  { %v2708_v53 = vpack.c.bf16 %v1044_v52, %v1043_v31 }
0x14da   :  { %2709 = vmatprep.subr.bf16.mxu1 %v2708_v53 }
0x14db   :  { %928 = vrot.lane.b32.xlu1 %v926_v30, %s3009_s3  ;;  %2711 = vmatpush3.bf16.msra.mxu1 %v2708_v53 }
0x14dc   :  { %2713 = vmatprep.subr.bf16.mxu1 %v2712_v59 }
0x14df   :  { %2715 = vmatpush3.bf16.msra.mxu1 %v2712_v59 }
0x14e0   :  { %2722 = vmatprep.subr.bf16.mxu1 %v3005_v0 }
0x1541   :  { %v1029_v46 = vpop.permute.xlu1 %1028 }
0x1542   :  { %v1031_v47 = vadd.f32 %v1029_v46, %v1021_v45 }
0x1544   :  { %2845 = vtanh.f32 %v1031_v47 }
0x1545   :  { %v377_v48 = vpop.permute.xlu1 %376 }
0x1546   :  { %380 = vst.msk [vmem:[#allocation2] sm:$0xc] %vm379_vm5, %v377_v48 }
0x1549   :  { %v601_v49 = vpop.permute.xlu1 %600 }
0x154a   :  { %604 = vst.msk [vmem:[#allocation2] sm:$0xc0] %vm603_vm6, %v601_v49 }
0x154d   :  { %v929_v50 = vpop.permute.xlu1 %928 }
0x154e   :  { %v2846_v51 = vpop.eup %2845  ;;  %931 = vst.msk [vmem:[#allocation2 + $0x8] sm:$0x30] %vm491_vm7, %v929_v50 }
0x154f   :  { %1034 = vrot.lane.b32.xlu0 %v2846_v51, %s3008_s15 }
0x1553   :  { %488 = vrot.lane.b32.xlu0 %v3185_v9, %s3009_s3  ;;  %v3265_v9 = vpack.c.bf16 %v1048_v55, %v1047_v54 }
0x1555   :  { %2718 = vmatpush3.bf16.msra.mxu0 %v3265_v9 }
0x1556   :  { %2719 = vmatprep.subr.bf16.mxu0 %v3005_v0 }
0x1557   :  { %817 = vrot.lane.b32.xlu0 %v3227_v7, %s3009_s3 }
0x1559   :  { %2721 = vmatpush3.bf16.msra.mxu0 %v3271_v60 }
0x155a   :  { %2728 = vmatprep.subr.bf16.mxu0 %v3005_v0 }
0x155c   :  { %2570 = vmatmul.mubr.f32.vlgmr.msra.gmra.mrb[10].mxu0 %v3007_v1 }
0x155d   :  { %2730 = vmatpush3.bf16.msra.mxu0 %v3265_v9  ;;  %2591 = vmatprep.mubr.msk.f32.mxu0 %vm3006_vm0, %v3007_v1 }
0x155e   :  { %2731 = vmatprep.subr.bf16.mxu0 %v3005_v0 }
0x1561   :  { %2733 = vmatpush3.bf16.msra.mxu0 %v3271_v60 }
0x1562   :  { %2740 = vmatprep.subr.bf16.mxu0 %v3005_v0 }
0x15c1   :  { %v1035_v61 = vpop.permute.xlu0 %1034 }
0x15c2   :  { %v1037_v62 = vmul.f32 %v2844_v42, %v1035_v61 }
0x15c4   :  { %1039 = vrot.lane.b32.xlu0 %v1037_v62, %s3009_s3 }
0x15c5   :  { %v489_v10 = vpop.permute.xlu0 %488 }
0x15c6   :  { %492 = vst.msk [vmem:[#allocation2] sm:$0x30] %vm491_vm7, %v489_v10 }
0x15c9   :  { %v818_v63 = vpop.permute.xlu0 %817 }
0x15ca   :  { %820 = vst.msk [vmem:[#allocation2 + $0x8] sm:$0xc] %vm379_vm5, %v818_v63 }
0x15cd   :  { %v1052_v2 = vld [vmem:[#allocation2] sm:$0xff] }
0x15ce   :  { %2558 = vmatprep.mubr.msk.f32.mxu1 %vm167_vm4, %v1052_v2 }
0x162f   :  { %v1207_v6 = vpop.f32.mrb[10].mxu0 }
0x1630   :  { %v2571_v7 = vpop.f32.mrb[11].mxu0 }
0x1636   :  { %v1040_v3 = vpop.permute.xlu0 %1039 }
0x1637   :  { %1042 = vst.msk [vmem:[#allocation2 + $0x8] sm:$0xc0] %vm603_vm6, %v1040_v3 }
0x163e   :  { %v1053_v4 = vld [vmem:[#allocation2 + $0x8] sm:$0xff] }
0x163f   :  { %2559 = vmatmul.mubr.msk.f32.vlgmr.msra.gmra.mrb[8].mxu1 %vm167_vm4, %v1053_v4 }
0x1640   :  { %2724 = vmatpush3.bf16.msra.mxu1 %v3265_v9  ;;  %2580 = vmatprep.mubr.msk.f32.mxu1 %vm3006_vm0, %v3007_v1 }
0x1641   :  { %2725 = vmatprep.subr.bf16.mxu1 %v3005_v0 }
0x1644   :  { %2727 = vmatpush3.bf16.msra.mxu1 %v3271_v60 }
0x1645   :  { %2734 = vmatprep.subr.bf16.mxu1 %v3005_v0 }
0x1712   :  { %v2560_v11 = vpop.f32.mrb[8].mxu1 }
0x1713   :  { %v3299_v12 = vadd.f32 %v2560_v11, %v2342_v8  ;;  %v1132_v14 = vpop.f32.mrb[9].mxu1 }
0x1714   :  { %v3301_v16 = vadd.f32 %v2342_v8, %v1132_v14 }
0x1716   :  { %v1211_v17 = vadd.f32 %v1207_v6, %v3301_v16 }
0x1718   :  { %2847 = vtanh.f32 %v1211_v17  ;;  %v2345_v19 = vmul.f32 -1.442695, %v1211_v17 }
0x171a   :  { %2849 = vpow2.f32 %v2345_v19 }
0x1722   :  { %v2848_v18 = vpop.eup %2847 }
0x1723   :  { %1221 = vrot.lane.b32.xlu1 %v2848_v18, %s3008_s15 }
0x1724   :  { %v2850_v20 = vpop.eup %2849 }
0x1725   :  { %v1215_v21 = vadd.f32 1.0, %v2850_v20 }
0x1727   :  { %2851 = vrcp.f32 %v1215_v21 }
0x1731   :  { %v2852_v22 = vpop.eup %2851 }
0x1732   :  { %v1219_v25 = vmul.f32 0.0, %v2852_v22 }
0x1795   :  { %v1222_v23 = vpop.permute.xlu1 %1221 }
0x1796   :  { %v1224_v24 = vmul.f32 %v2852_v22, %v1222_v23 }
0x1798   :  { %1226 = vrot.lane.b32.xlu0 %v1224_v24, %s3008_s15 }
0x180a   :  { %v1227_v26 = vpop.permute.xlu0 %1226 }
0x180b   :  { %v1229_v27 = vadd.f32 %v1227_v26, %v1219_v25 }
0x180d   :  { %2853 = vtanh.f32 %v1229_v27  ;;  %v1323_v43 = vrot.slane %v1229_v27, 6 }
0x1817   :  { %v2854_v28 = vpop.eup %2853 }
0x1818   :  { %1232 = vrot.lane.b32.xlu1 %v2854_v28, %s3008_s15 }
0x188a   :  { %v1233_v29 = vpop.permute.xlu1 %1232 }
0x188b   :  { %v3307_v15 = vmul.f32 %v2852_v22, %v1233_v29 }
0x188d   :  { %1237 = vrot.lane.b32.xlu0 %v3307_v15, %s3009_s3 }
0x18ff   :  { %v1238_v30 = vpop.permute.xlu0 %1237 }
0x1900   :  { %2581 = vmatmul.mubr.msk.f32.vlgmr.msra.gmra.mrb[10].mxu1 %vm167_vm4, %v1238_v30 }
0x1901   :  { %2736 = vmatpush3.bf16.msra.mxu1 %v3265_v9  ;;  %2602 = vmatprep.mubr.msk.f32.mxu1 %vm3006_vm0, %v3007_v1 }
0x1902   :  { %2737 = vmatprep.subr.bf16.mxu1 %v3005_v0 }
0x1905   :  { %2739 = vmatpush3.bf16.msra.mxu1 %v3271_v60 }
0x1906   :  { %2746 = vmatprep.subr.bf16.mxu1 %v3005_v0 }
0x19d3   :  { %v1307_v32 = vpop.f32.mrb[10].mxu1 }
0x19d4   :  { %v1312_v33 = vrot.slane %v1307_v32, 6  ;;  %v2582_v34 = vpop.f32.mrb[11].mxu1 }
0x19d6   :  { %v1314_v35 = vadd.f32 %v1312_v33, %v3301_v16 }
0x19d8   :  { %2855 = vtanh.f32 %v1314_v35  ;;  %v2347_v37 = vmul.f32 -1.442695, %v1314_v35 }
0x19da   :  { %2857 = vpow2.f32 %v2347_v37 }
0x19e2   :  { %v2856_v36 = vpop.eup %2855 }
0x19e3   :  { %1327 = vrot.lane.b32.xlu1 %v2856_v36, %s3008_s15 }
0x19e4   :  { %v2858_v38 = vpop.eup %2857 }
0x19e5   :  { %v1318_v39 = vadd.f32 1.0, %v2858_v38 }
0x19e7   :  { %2859 = vrcp.f32 %v1318_v39 }
0x19f1   :  { %v2860_v40 = vpop.eup %2859 }
0x19f2   :  { %v1325_v44 = vmul.f32 %v2860_v40, %v1323_v43 }
0x1a55   :  { %v1328_v41 = vpop.permute.xlu1 %1327 }
0x1a56   :  { %v1330_v42 = vmul.f32 %v2860_v40, %v1328_v41 }
0x1a58   :  { %1332 = vrot.lane.b32.xlu0 %v1330_v42, %s3008_s15 }
0x1aca   :  { %v1333_v13 = vpop.permute.xlu0 %1332 }
0x1acb   :  { %v1335_v45 = vadd.f32 %v1333_v13, %v1325_v44 }
0x1acd   :  { %2861 = vtanh.f32 %v1335_v45  ;;  %v1430_v61 = vrot.slane %v1335_v45, 6 }
0x1ad7   :  { %v2862_v46 = vpop.eup %2861 }
0x1ad8   :  { %1338 = vrot.lane.b32.xlu1 %v2862_v46, %s3008_s15 }
0x1b4a   :  { %v1339_v47 = vpop.permute.xlu1 %1338 }
0x1b4b   :  { %v3322_v48 = vmul.f32 %v2860_v40, %v1339_v47 }
0x1b4d   :  { %v1343_v49 = vrot.slane %v3322_v48, 2 }
0x1b4f   :  { %1344 = vrot.lane.b32.xlu0 %v1343_v49, %s3009_s3 }
0x1bc1   :  { %v1345_v50 = vpop.permute.xlu0 %1344 }
0x1bc2   :  { %2592 = vmatmul.mubr.msk.f32.vlgmr.msra.gmra.mrb[12].mxu0 %vm167_vm4, %v1345_v50 }
0x1bc3   :  { %2742 = vmatpush3.bf16.msra.mxu0 %v3265_v9  ;;  %2613 = vmatprep.mubr.msk.f32.mxu0 %vm3006_vm0, %v3007_v1 }
0x1bc4   :  { %2743 = vmatprep.subr.bf16.mxu0 %v3005_v0 }
0x1bc7   :  { %2745 = vmatpush3.bf16.msra.mxu0 %v3271_v60 }
0x1bc8   :  { %2752 = vmatprep.subr.bf16.mxu0 %v3005_v0 }
0x1c95   :  { %v1414_v51 = vpop.f32.mrb[12].mxu0 }
0x1c96   :  { %v1419_v31 = vrot.slane %v1414_v51, 4  ;;  %v2593_v52 = vpop.f32.mrb[13].mxu0 }
0x1c98   :  { %v1421_v53 = vadd.f32 %v1419_v31, %v3301_v16 }
0x1c9a   :  { %2863 = vtanh.f32 %v1421_v53  ;;  %v2349_v55 = vmul.f32 -1.442695, %v1421_v53 }
0x1c9c   :  { %2865 = vpow2.f32 %v2349_v55 }
0x1ca4   :  { %v2864_v54 = vpop.eup %2863 }
0x1ca5   :  { %1434 = vrot.lane.b32.xlu1 %v2864_v54, %s3008_s15 }
0x1ca6   :  { %v2866_v56 = vpop.eup %2865 }
0x1ca7   :  { %v1425_v57 = vadd.f32 1.0, %v2866_v56 }
0x1ca9   :  { %2867 = vrcp.f32 %v1425_v57 }
0x1cb3   :  { %v2868_v58 = vpop.eup %2867 }
0x1cb4   :  { %v1432_v62 = vmul.f32 %v2868_v58, %v1430_v61 }
0x1d17   :  { %v1435_v5 = vpop.permute.xlu1 %1434 }
0x1d18   :  { %v1437_v59 = vmul.f32 %v2868_v58, %v1435_v5 }
0x1d1a   :  { %1439 = vrot.lane.b32.xlu0 %v1437_v59, %s3008_s15 }
0x1d8c   :  { %v1440_v10 = vpop.permute.xlu0 %1439 }
0x1d8d   :  { %v1442_v63 = vadd.f32 %v1440_v10, %v1432_v62 }
0x1d8f   :  { %2869 = vtanh.f32 %v1442_v63  ;;  %v1537_v25 = vrot.slane %v1442_v63, 6 }
0x1d99   :  { %v2870_v2 = vpop.eup %2869 }
0x1d9a   :  { %1445 = vrot.lane.b32.xlu1 %v2870_v2, %s3008_s15 }
0x1e0c   :  { %v1446_v3 = vpop.permute.xlu1 %1445 }
0x1e0d   :  { %v3337_v4 = vmul.f32 %v2868_v58, %v1446_v3 }
0x1e0f   :  { %v1450_v6 = vrot.slane %v3337_v4, 4 }
0x1e11   :  { %1451 = vrot.lane.b32.xlu0 %v1450_v6, %s3009_s3 }
0x1e83   :  { %v1452_v7 = vpop.permute.xlu0 %1451 }
0x1e84   :  { %2603 = vmatmul.mubr.msk.f32.vlgmr.msra.gmra.mrb[12].mxu1 %vm167_vm4, %v1452_v7 }
0x1e85   :  { %2748 = vmatpush3.bf16.msra.mxu1 %v3265_v9  ;;  %2624 = vmatprep.mubr.msk.f32.mxu1 %vm3006_vm0, %v3007_v1 }
0x1e86   :  { %2749 = vmatprep.subr.bf16.mxu1 %v3005_v0 }
0x1e89   :  { %2751 = vmatpush3.bf16.msra.mxu1 %v3271_v60 }
0x1e8a   :  { %2758 = vmatprep.subr.bf16.mxu1 %v3005_v0 }
0x1f57   :  { %v1521_v8 = vpop.f32.mrb[12].mxu1 }
0x1f58   :  { %v1526_v11 = vrot.slane %v1521_v8, 2  ;;  %v2604_v14 = vpop.f32.mrb[13].mxu1 }
0x1f5a   :  { %v1528_v17 = vadd.f32 %v1526_v11, %v3301_v16 }
0x1f5c   :  { %2871 = vtanh.f32 %v1528_v17  ;;  %v2351_v19 = vmul.f32 -1.442695, %v1528_v17 }
0x1f5e   :  { %2873 = vpow2.f32 %v2351_v19 }
0x1f66   :  { %v2872_v18 = vpop.eup %2871 }
0x1f67   :  { %1541 = vrot.lane.b32.xlu1 %v2872_v18, %s3008_s15 }
0x1f68   :  { %v2874_v20 = vpop.eup %2873 }
0x1f69   :  { %v1532_v21 = vadd.f32 1.0, %v2874_v20 }
0x1f6b   :  { %2875 = vrcp.f32 %v1532_v21 }
0x1f75   :  { %v2876_v22 = vpop.eup %2875 }
0x1f76   :  { %v1539_v26 = vmul.f32 %v2876_v22, %v1537_v25 }
0x1fd9   :  { %v1542_v23 = vpop.permute.xlu1 %1541 }
0x1fda   :  { %v1544_v24 = vmul.f32 %v2876_v22, %v1542_v23 }
0x1fdc   :  { %1546 = vrot.lane.b32.xlu0 %v1544_v24, %s3008_s15 }
0x204e   :  { %v1547_v27 = vpop.permute.xlu0 %1546 }
0x204f   :  { %v1549_v28 = vadd.f32 %v1547_v27, %v1539_v26 }
0x2051   :  { %2877 = vtanh.f32 %v1549_v28  ;;  %v1641_v44 = vrot.slane %v1549_v28, 6 }
0x205b   :  { %v2878_v16 = vpop.eup %2877 }
0x205c   :  { %1552 = vrot.lane.b32.xlu1 %v2878_v16, %s3008_s15 }
0x20ce   :  { %v1553_v29 = vpop.permute.xlu1 %1552 }
0x20cf   :  { %v3352_v30 = vmul.f32 %v2876_v22, %v1553_v29 }
0x20d1   :  { %v1557_v32 = vrot.slane %v3352_v30, 6 }
0x20d3   :  { %1558 = vrot.lane.b32.xlu0 %v1557_v32, %s3009_s3 }
0x2145   :  { %v1559_v33 = vpop.permute.xlu0 %1558 }
0x2146   :  { %2614 = vmatmul.mubr.msk.f32.vlgmr.msra.gmra.mrb[14].mxu0 %vm167_vm4, %v1559_v33 }
0x2147   :  { %2754 = vmatpush3.bf16.msra.mxu0 %v3265_v9  ;;  %2635 = vmatprep.mubr.msk.f32.mxu0 %vm3006_vm0, %v3007_v1 }
0x2148   :  { %2755 = vmatprep.subr.bf16.mxu0 %v3005_v0 }
0x214b   :  { %2757 = vmatpush3.bf16.msra.mxu0 %v3271_v60 }
0x214c   :  { %2764 = vmatprep.subr.bf16.mxu0 %v3005_v0 }
0x2219   :  { %v1628_v34 = vpop.f32.mrb[14].mxu0 }
0x221a   :  { %v1632_v35 = vadd.f32 %v1628_v34, %v3299_v12  ;;  %v2615_v36 = vpop.f32.mrb[15].mxu0 }
0x221c   :  { %2879 = vtanh.f32 %v1632_v35  ;;  %v2353_v38 = vmul.f32 -1.442695, %v1632_v35 }
0x221e   :  { %2881 = vpow2.f32 %v2353_v38 }
0x2226   :  { %v2880_v37 = vpop.eup %2879 }
0x2227   :  { %1645 = vrot.lane.b32.xlu1 %v2880_v37, %s3008_s15 }
0x2228   :  { %v2882_v39 = vpop.eup %2881 }
0x2229   :  { %v1636_v40 = vadd.f32 1.0, %v2882_v39  ;;  %v2360_v39 = vld [vmem:[%s3479_s7] ss:$0 sm:$0xff] }
0x222b   :  { %2883 = vrcp.f32 %v1636_v40 }
0x2235   :  { %v2884_v41 = vpop.eup %2883 }
0x2236   :  { %v1643_v13 = vmul.f32 %v2884_v41, %v1641_v44 }
0x2299   :  { %v1646_v42 = vpop.permute.xlu1 %1645 }
0x229a   :  { %v1648_v43 = vmul.f32 %v2884_v41, %v1646_v42 }
0x229c   :  { %1650 = vrot.lane.b32.xlu0 %v1648_v43, %s3008_s15 }
0x230e   :  { %v1651_v45 = vpop.permute.xlu0 %1650 }
0x230f   :  { %v1653_v46 = vadd.f32 %v1651_v45, %v1643_v13 }
0x2311   :  { %2885 = vtanh.f32 %v1653_v46 }
0x231b   :  { %v2886_v47 = vpop.eup %2885 }
0x231c   :  { %1656 = vrot.lane.b32.xlu1 %v2886_v47, %s3008_s15 }
0x238e   :  { %v1657_v49 = vpop.permute.xlu1 %1656 }
0x238f   :  { %v3367_v50 = vmul.f32 %v2884_v41, %v1657_v49 }
0x2391   :  { %1661 = vrot.lane.b32.xlu0 %v3367_v50, %s3009_s3 }
0x2403   :  { %v1662_v51 = vpop.permute.xlu0 %1661 }
0x2404   :  { %2625 = vmatmul.mubr.msk.f32.vlgmr.msra.gmra.mrb[14].mxu1 %vm167_vm4, %v1662_v51 }
0x2405   :  { %2760 = vmatpush3.bf16.msra.mxu1 %v3265_v9  ;;  %2646 = vmatprep.mubr.msk.f32.mxu1 %vm3006_vm0, %v3007_v1 }
0x2406   :  { %2761 = vmatprep.subr.bf16.mxu1 %v3005_v0 }
0x2409   :  { %2763 = vmatpush3.bf16.msra.mxu1 %v3271_v60  ;;  %v1747_v60 = vrot.slane %v1653_v46, 6 }
0x24d7   :  { %v1731_v31 = vpop.f32.mrb[14].mxu1 }
0x24d8   :  { %v1736_v52 = vrot.slane %v1731_v31, 6  ;;  %v2626_v53 = vpop.f32.mrb[15].mxu1 }
0x24da   :  { %v1738_v54 = vadd.f32 %v1736_v52, %v3299_v12 }
0x24dc   :  { %2887 = vtanh.f32 %v1738_v54  ;;  %v2355_v56 = vmul.f32 -1.442695, %v1738_v54 }
0x24de   :  { %2889 = vpow2.f32 %v2355_v56 }
0x24e6   :  { %v2888_v55 = vpop.eup %2887 }
0x24e7   :  { %1751 = vrot.lane.b32.xlu1 %v2888_v55, %s3008_s15 }
0x24e8   :  { %v2890_v57 = vpop.eup %2889 }
0x24e9   :  { %v1742_v9 = vadd.f32 1.0, %v2890_v57 }
0x24eb   :  { %2891 = vrcp.f32 %v1742_v9 }
0x24f5   :  { %v2892_v58 = vpop.eup %2891 }
0x24f6   :  { %v1749_v61 = vmul.f32 %v2892_v58, %v1747_v60 }
0x2559   :  { %v1752_v5 = vpop.permute.xlu1 %1751 }
0x255a   :  { %v1754_v59 = vmul.f32 %v2892_v58, %v1752_v5 }
0x255c   :  { %1756 = vrot.lane.b32.xlu0 %v1754_v59, %s3008_s15 }
0x25ce   :  { %v1757_v62 = vpop.permute.xlu0 %1756 }
0x25cf   :  { %v1759_v10 = vadd.f32 %v1757_v62, %v1749_v61 }
0x25d1   :  { %2893 = vtanh.f32 %v1759_v10 }
0x25db   :  { %v2894_v63 = vpop.eup %2893 }
0x25dc   :  { %1762 = vrot.lane.b32.xlu1 %v2894_v63, %s3008_s15 }
0x264e   :  { %v1763_v2 = vpop.permute.xlu1 %1762 }
0x264f   :  { %v3381_v3 = vmul.f32 %v2892_v58, %v1763_v2 }
0x2651   :  { %v1767_v6 = vrot.slane %v3381_v3, 2 }
0x2653   :  { %1768 = vrot.lane.b32.xlu0 %v1767_v6, %s3009_s3 }
0x26c5   :  { %v1769_v7 = vpop.permute.xlu0 %1768 }
0x26c6   :  { %2636 = vmatmul.mubr.msk.f32.vlgmr.msra.gmra.mrb[16].mxu0 %vm167_vm4, %v1769_v7 }
0x26c7   :  { %2657 = vmatprep.mubr.msk.f32.mxu0 %vm3006_vm0, %v3007_v1  ;;  %v1854_v1 = vrot.slane %v1759_v10, 6 }
0x2799   :  { %v1838_v8 = vpop.f32.mrb[16].mxu0 }
0x279a   :  { %v1843_v11 = vrot.slane %v1838_v8, 4  ;;  %v2637_v14 = vpop.f32.mrb[17].mxu0 }
0x279c   :  { %v1845_v17 = vadd.f32 %v1843_v11, %v3299_v12 }
0x279e   :  { %2895 = vtanh.f32 %v1845_v17  ;;  %v2357_v19 = vmul.f32 -1.442695, %v1845_v17 }
0x27a0   :  { %2897 = vpow2.f32 %v2357_v19 }
0x27a8   :  { %v2896_v18 = vpop.eup %2895 }
0x27a9   :  { %1858 = vrot.lane.b32.xlu1 %v2896_v18, %s3008_s15 }
0x27aa   :  { %v2898_v20 = vpop.eup %2897 }
0x27ab   :  { %v1849_v21 = vadd.f32 1.0, %v2898_v20 }
0x27ad   :  { %2899 = vrcp.f32 %v1849_v21  ;;  %v3010_v21 = vmov 0  }
0x27ae   :  { %2782 = vset.pattern.permute.xlu1 %v3010_v21  ;;  %2781 = vset.pattern.permute.xlu0 %v3010_v21 }
0x27b7   :  { %v2900_v22 = vpop.eup %2899 }
0x27b8   :  { %v1856_v25 = vmul.f32 %v2900_v22, %v1854_v1 }
0x281b   :  { %v1859_v23 = vpop.permute.xlu1 %1858 }
0x281c   :  { %v1861_v24 = vmul.f32 %v2900_v22, %v1859_v23  ;;  %v1997_v23 = vstv %s3480_s8 }
0x281e   :  { %1863 = vrot.lane.b32.xlu0 %v1861_v24, %s3008_s15 }
0x2890   :  { %v1864_v26 = vpop.permute.xlu0 %1863 }
0x2891   :  { %v1866_v27 = vadd.f32 %v1864_v26, %v1856_v25 }
0x2893   :  { %2901 = vtanh.f32 %v1866_v27  ;;  %v1961_v51 = vrot.slane %v1866_v27, 6 }
0x289d   :  { %v2902_v28 = vpop.eup %2901 }
0x289e   :  { %1869 = vrot.lane.b32.xlu1 %v2902_v28, %s3008_s15 }
0x2910   :  { %v1870_v16 = vpop.permute.xlu1 %1869 }
0x2911   :  { %v3392_v29 = vmul.f32 %v2900_v22, %v1870_v16 }
0x2913   :  { %v1874_v32 = vrot.slane %v3392_v29, 4 }
0x2915   :  { %1875 = vrot.lane.b32.xlu0 %v1874_v32, %s3009_s3 }
0x2987   :  { %v1876_v33 = vpop.permute.xlu0 %1875 }
0x2988   :  { %2647 = vmatmul.mubr.msk.f32.vlgmr.msra.gmra.mrb[16].mxu1 %vm167_vm4, %v1876_v33 }
0x2a5b   :  { %v1945_v34 = vpop.f32.mrb[16].mxu1 }
0x2a5c   :  { %v1950_v35 = vrot.slane %v1945_v34, 2  ;;  %v2648_v36 = vpop.f32.mrb[17].mxu1 }
0x2a5e   :  { %v1952_v37 = vadd.f32 %v1950_v35, %v3299_v12 }
0x2a60   :  { %2903 = vtanh.f32 %v1952_v37  ;;  %v2359_v40 = vmul.f32 -1.442695, %v1952_v37 }
0x2a62   :  { %2905 = vpow2.f32 %v2359_v40 }
0x2a6a   :  { %v2904_v38 = vpop.eup %2903 }
0x2a6b   :  { %1965 = vrot.lane.b32.xlu1 %v2904_v38, %s3008_s15 }
0x2a6c   :  { %v2906_v41 = vpop.eup %2905 }
0x2a6d   :  { %v1956_v42 = vadd.f32 1.0, %v2906_v41 }
0x2a6f   :  { %1986 = vrot.lane.b32.xlu1 %v2360_v39, %s3009_s3  ;;  %2907 = vrcp.f32 %v1956_v42 }
0x2a79   :  { %v2908_v43 = vpop.eup %2907 }
0x2a7a   :  { %v1963_v31 = vmul.f32 %v2908_v43, %v1961_v51 }
0x2add   :  { %v1966_v44 = vpop.permute.xlu1 %1965 }
0x2ade   :  { %v1968_v13 = vmul.f32 %v2908_v43, %v1966_v44 }
0x2ae0   :  { %1970 = vrot.lane.b32.xlu0 %v1968_v13, %s3008_s15 }
0x2ae1   :  { %v1987_v12 = vpop.permute.xlu1 %1986 }
0x2ae2   :  { %v1999_v45 = vmul.f32 %v1987_v12, %v3322_v48  ;;  %v2008_v46 = vmul.f32 %v1987_v12, %v3337_v4  ;;  %v2026_v47 = vmul.f32 %v1987_v12, %v3367_v50  ;;  %v2044_v49 = vmul.f32 %v1987_v12, %v3392_v29 }
0x2ae3   :  { %v1989_v57 = vmul.f32 %v1987_v12, %v3307_v15  ;;  %v2017_v9 = vmul.f32 %v1987_v12, %v3352_v30  ;;  %v2035_v58 = vmul.f32 %v1987_v12, %v3381_v3 }
0x2ae4   :  { %2001 = vrot.lane.b32.xlu1 %v1999_v45, %s3009_s3 }
0x2ae8   :  { %2010 = vrot.lane.b32.xlu1 %v2008_v46, %s3009_s3 }
0x2aec   :  { %2028 = vrot.lane.b32.xlu1 %v2026_v47, %s3009_s3 }
0x2af0   :  { %2046 = vrot.lane.b32.xlu1 %v2044_v49, %s3009_s3 }
0x2b52   :  { %v1971_v52 = vpop.permute.xlu0 %1970 }
0x2b53   :  { %v1973_v53 = vadd.f32 %v1971_v52, %v1963_v31 }
0x2b55   :  { %2909 = vtanh.f32 %v1973_v53 }
0x2b56   :  { %v2002_v54 = vpop.permute.xlu1 %2001 }
0x2b57   :  { %v2004_v55 = vsel %vm379_vm5, %v2002_v54, 0.0 }
0x2b58   :  { %2005 = vadd.xlane.f32.xlu1 %v2004_v55 }
0x2b5a   :  { %v2011_v6 = vpop.permute.xlu1 %2010 }
0x2b5b   :  { %v2013_v11 = vsel %vm491_vm7, %v2011_v6, 0.0 }
0x2b5e   :  { %v2029_v8 = vpop.permute.xlu1 %2028 }
0x2b5f   :  { %v2910_v56 = vpop.eup %2909  ;;  %v2031_v14 = vsel %vm270_vm3, %v2029_v8, 0.0 }
0x2b60   :  { %1976 = vrot.lane.b32.xlu0 %v2910_v56, %s3008_s15 }
0x2b62   :  { %v2047_v17 = vpop.permute.xlu1 %2046 }
0x2b63   :  { %v2049_v18 = vsel %vm491_vm7, %v2047_v17, 0.0 }
0x2b64   :  { %1991 = vrot.lane.b32.xlu0 %v1989_v57, %s3009_s3 }
0x2b68   :  { %2019 = vrot.lane.b32.xlu0 %v2017_v9, %s3009_s3 }
0x2b6c   :  { %2037 = vrot.lane.b32.xlu0 %v2035_v58, %s3009_s3 }
0x2bd2   :  { %v1977_v5 = vpop.permute.xlu0 %1976 }
0x2bd3   :  { %v3420_v59 = vmul.f32 %v2908_v43, %v1977_v5 }
0x2bd5   :  { %v2053_v60 = vmul.f32 %v1987_v12, %v3420_v59 }
0x2bd6   :  { %v1992_v61 = vpop.permute.xlu0 %1991 }
0x2bd7   :  { %2055 = vrot.lane.b32.xlu0 %v2053_v60, %s3009_s3  ;;  %v1994_v7 = vsel %vm270_vm3, %v1992_v61, 0.0 }
0x2bda   :  { %v2020_v62 = vpop.permute.xlu0 %2019 }
0x2bdb   :  { %v2022_v10 = vsel %vm603_vm6, %v2020_v62, 0.0 }
0x2bdc   :  { %2023 = vadd.xlane.f32.xlu1 %v2022_v10 }
0x2bde   :  { %v2038_v63 = vpop.permute.xlu0 %2037 }
0x2bdf   :  { %v2040_v2 = vsel %vm379_vm5, %v2038_v63, 0.0 }
0x2be0   :  { %2041 = vadd.xlane.f32.xlu1 %v2040_v2 }
0x2be5   :  { %v2006_v24 = vpop.xlane.xlu1 %2005 }
0x2be6   :  { %v2007_v25 = vadd.f32 %v2006_v24, %v1997_v23 }
0x2be8   :  { %v2063_v16 = vrot.slane %v2007_v25, 2 }
0x2bf6   :  { %1995 = vadd.xlane.f32.xlu0 %v1994_v7 }
0x2bfa   :  { %2014 = vadd.xlane.f32.xlu0 %v2013_v11 }
0x2bfe   :  { %2032 = vadd.xlane.f32.xlu0 %v2031_v14 }
0x2c02   :  { %2050 = vadd.xlane.f32.xlu0 %v2049_v18 }
0x2c49   :  { %v2056_v19 = vpop.permute.xlu0 %2055 }
0x2c4a   :  { %v2058_v20 = vsel %vm603_vm6, %v2056_v19, 0.0 }
0x2c4b   :  { %2059 = vadd.xlane.f32.xlu1 %v2058_v20 }
0x2c69   :  { %v2024_v28 = vpop.xlane.xlu1 %2023 }
0x2c6a   :  { %v2025_v33 = vadd.f32 %v2024_v28, %v1997_v23 }
0x2c6c   :  { %v2071_v37 = vrot.slane %v2025_v33, 6 }
0x2c6d   :  { %v2042_v38 = vpop.xlane.xlu1 %2041 }
0x2c6e   :  { %v2043_v41 = vadd.f32 %v2042_v38, %v1997_v23  ;;  %v2219_v38 = vld [vmem:[%s3481_s9] sm:$0xff] }
0x2c70   :  { %v2076_v13 = vrot.slane %v2043_v41, 2 }
0x2c83   :  { %v1996_v22 = vpop.xlane.xlu0 %1995 }
0x2c84   :  { %v1998_v27 = vadd.f32 %v1997_v23, %v1996_v22 }
0x2c86   :  { %v2065_v34 = vmax.f32 %v1998_v27, %v2063_v16 }
0x2c87   :  { %v2015_v1 = vpop.xlane.xlu0 %2014 }
0x2c88   :  { %v2016_v26 = vadd.f32 %v2015_v1, %v1997_v23 }
0x2c8a   :  { %v2067_v32 = vrot.slane %v2016_v26, 4 }
0x2c8b   :  { %v2033_v35 = vpop.xlane.xlu0 %2032 }
0x2c8c   :  { %v2069_v36 = vmax.f32 %v2065_v34, %v2067_v32  ;;  %v2034_v42 = vadd.f32 %v2033_v35, %v1997_v23 }
0x2c8e   :  { %v2073_v39 = vmax.f32 %v2069_v36, %v2071_v37 }
0x2c8f   :  { %v2051_v40 = vpop.xlane.xlu0 %2050 }
0x2c90   :  { %v2074_v43 = vmax.f32 %v2073_v39, %v2034_v42  ;;  %v2052_v44 = vadd.f32 %v2051_v40, %v1997_v23  ;;  %v2220_v39 = vld [vmem:[%s3481_s9 + $0x8] sm:$0xff]  ;;  %v2221_v40 = vld [vmem:[%s3481_s9 + $0x10] sm:$0xff] }
0x2c92   :  { %v2078_v12 = vmax.f32 %v2074_v43, %v2076_v13  ;;  %v2080_v45 = vrot.slane %v2052_v44, 4 }
0x2c94   :  { %v2082_v49 = vmax.f32 %v2078_v12, %v2080_v45 }
0x2cd8   :  { %v2060_v46 = vpop.xlane.xlu1 %2059 }
0x2cd9   :  { %v2061_v47 = vadd.f32 %v2060_v46, %v1997_v23 }
0x2cdb   :  { %v2084_v51 = vrot.slane %v2061_v47, 6 }
0x2cdd   :  { %v2086_v31 = vmax.f32 %v2082_v49, %v2084_v51 }
0x2cdf   :  { %v2087_v52 = vsub.f32 %v1998_v27, %v2086_v31  ;;  %v2099_v53 = vrot.slane %v2086_v31, 6  ;;  %v2117_v54 = vrot.slane %v2086_v31, 4  ;;  %v2135_v55 = vrot.slane %v2086_v31, 2 }
0x2ce0   :  { %v2153_v56 = vsub.f32 %v2034_v42, %v2086_v31  ;;  %v2222_v42 = vld [vmem:[%s3481_s9 + $0x18] sm:$0xff] }
0x2ce1   :  { %v2088_v57 = vmul.f32 1.442695, %v2087_v52  ;;  %v2101_v9 = vsub.f32 %v2007_v25, %v2099_v53  ;;  %v2119_v58 = vsub.f32 %v2016_v26, %v2117_v54  ;;  %v2137_v5 = vsub.f32 %v2025_v33, %v2135_v55 }
0x2ce2   :  { %v2154_v60 = vmul.f32 1.442695, %v2153_v56  ;;  %v2164_v61 = vsub.f32 %v2043_v41, %v2099_v53  ;;  %v2180_v2 = vsub.f32 %v2052_v44, %v2117_v54  ;;  %v2196_v7 = vsub.f32 %v2061_v47, %v2135_v55 }
0x2ce3   :  { %2911 = vpow2.f32 %v2088_v57  ;;  %v2102_v62 = vmul.f32 1.442695, %v2101_v9  ;;  %v2120_v10 = vmul.f32 1.442695, %v2119_v58  ;;  %v2138_v63 = vmul.f32 1.442695, %v2137_v5 }
0x2ce4   :  { %2913 = vpow2.f32 %v2154_v60  ;;  %v2165_v6 = vmul.f32 1.442695, %v2164_v61  ;;  %v2181_v8 = vmul.f32 1.442695, %v2180_v2  ;;  %v2197_v14 = vmul.f32 1.442695, %v2196_v7 }
0x2ce5   :  { %2915 = vpow2.f32 %v2102_v62  ;;  %v2765_v41 = vpack.c.bf16 %v2220_v39, %v2219_v38  ;;  %v2768_v43 = vpack.c.bf16 %v2222_v42, %v2221_v40 }
0x2ce6   :  { %2917 = vpow2.f32 %v2120_v10 }
0x2ce7   :  { %2919 = vpow2.f32 %v2138_v63  ;;  %2766 = vmatpush3.bf16.msra.mxu0 %v2765_v41 }
0x2ce8   :  { %2921 = vpow2.f32 %v2165_v6  ;;  %2767 = vmatprep.subr.bf16.mxu0 %v3005_v0 }
0x2ce9   :  { %2923 = vpow2.f32 %v2181_v8 }
0x2cea   :  { %2925 = vpow2.f32 %v2197_v14 }
0x2ceb   :  { %2769 = vmatpush3.bf16.msra.mxu0 %v2768_v43 }
0x2ced   :  { %v2912_v11 = vpop.eup %2911 }
0x2cee   :  { %v2914_v17 = vpop.eup %2913  ;;  %2093 = vperm.xlu1 %2782, %v2912_v11  }
0x2cef   :  { %v2916_v18 = vpop.eup %2915 }
0x2cf0   :  { %v2918_v19 = vpop.eup %2917  ;;  %2109 = vperm.xlu0 %2781, %v2916_v18   ;;  %v2105_v20 = vrot.slane %v2916_v18, 2 }
0x2cf1   :  { %v2920_v21 = vpop.eup %2919  ;;  %v2123_v23 = vrot.slane %v2918_v19, 4 }
0x2cf2   :  { %2159 = vperm.xlu1 %2782, %v2914_v17   ;;  %v2107_v22 = vadd.f32 %v2912_v11, %v2105_v20  ;;  %v2141_v1 = vrot.slane %v2920_v21, 6  ;;  %v2922_v25 = vpop.eup %2921 }
0x2cf3   :  { %v2924_v27 = vpop.eup %2923  ;;  %v2168_v16 = vrot.slane %v2922_v25, 2 }
0x2cf4   :  { %v2125_v24 = vadd.f32 %v2123_v23, %v2107_v22  ;;  %v2184_v33 = vrot.slane %v2924_v27, 4  ;;  %v2926_v34 = vpop.eup %2925 }
0x2cf5   :  { %v2200_v36 = vrot.slane %v2926_v34, 6 }
0x2cf6   :  { %2127 = vperm.xlu1 %2782, %v2918_v19   ;;  %v2143_v26 = vadd.f32 %v2141_v1, %v2125_v24 }
0x2cf8   :  { %v2156_v28 = vadd.f32 %v2914_v17, %v2143_v26 }
0x2cfa   :  { %2145 = vperm.xlu1 %2782, %v2920_v21   ;;  %v2170_v32 = vadd.f32 %v2168_v16, %v2156_v28 }
0x2cfc   :  { %v2186_v35 = vadd.f32 %v2184_v33, %v2170_v32 }
0x2cfe   :  { %2172 = vperm.xlu1 %2782, %v2922_v25   ;;  %v2202_v37 = vadd.f32 %v2200_v36, %v2186_v35 }
0x2d02   :  { %2214 = vperm.xlu1 %2782, %v2202_v37  }
0x2d06   :  { %2188 = vperm.xlu1 %2782, %v2924_v27  }
0x2d0a   :  { %2204 = vperm.xlu1 %2782, %v2926_v34  }
0x2d6d   :  { %v2094_v44 = vpop.permute.xlu1 %2093 }
0x2d6e   :  { %v2096_v52 = vmul.f32 %v2094_v44, %v3307_v15 }
0x2d6f   :  { %v2110_v12 = vpop.permute.xlu0 %2109 }
0x2d70   :  { %v2112_v46 = vmul.f32 %v2110_v12, %v3322_v48 }
0x2d71   :  { %v2160_v13 = vpop.permute.xlu1 %2159 }
0x2d72   :  { %v2114_v51 = vrot.slane %v2112_v46, 2  ;;  %v2162_v5 = vmul.f32 %v2160_v13, %v3367_v50  ;;  %v2361_v50 = vld [vmem:[%s3482_s10] ss:$0 sm:$0xff] }
0x2d74   :  { %v2116_v55 = vadd.f32 %v2114_v51, %v2096_v52 }
0x2d75   :  { %v2128_v45 = vpop.permute.xlu1 %2127 }
0x2d76   :  { %v2130_v47 = vmul.f32 %v2128_v45, %v3337_v4 }
0x2d78   :  { %v2132_v53 = vrot.slane %v2130_v47, 4 }
0x2d79   :  { %v2146_v49 = vpop.permute.xlu1 %2145 }
0x2d7a   :  { %v2148_v31 = vmul.f32 %v2146_v49, %v3352_v30  ;;  %v2134_v0 = vadd.f32 %v2132_v53, %v2116_v55 }
0x2d7c   :  { %v2150_v56 = vrot.slane %v2148_v31, 6 }
0x2d7d   :  { %v2173_v54 = vpop.permute.xlu1 %2172 }
0x2d7e   :  { %v2152_v9 = vadd.f32 %v2150_v56, %v2134_v0  ;;  %v2175_v58 = vmul.f32 %v2173_v54, %v3381_v3 }
0x2d80   :  { %v2163_v4 = vadd.f32 %v2162_v5, %v2152_v9  ;;  %v2177_v60 = vrot.slane %v2175_v58, 2 }
0x2d81   :  { %v2215_v57 = vpop.permute.xlu1 %2214 }
0x2d82   :  { %2927 = vrcp.f32 %v2215_v57  ;;  %v2179_v15 = vadd.f32 %v2177_v60, %v2163_v4 }
0x2d85   :  { %v2189_v48 = vpop.permute.xlu1 %2188 }
0x2d86   :  { %v2191_v61 = vmul.f32 %v2189_v48, %v3392_v29 }
0x2d88   :  { %v2193_v30 = vrot.slane %v2191_v61, 4 }
0x2d89   :  { %v2205_v62 = vpop.permute.xlu1 %2204 }
0x2d8a   :  { %v2207_v10 = vmul.f32 %v2205_v62, %v3420_v59  ;;  %v2195_v63 = vadd.f32 %v2193_v30, %v2179_v15 }
0x2d8c   :  { %v2209_v2 = vrot.slane %v2207_v10, 6  ;;  %v2928_v7 = vpop.eup %2927 }
0x2d8e   :  { %v2211_v6 = vadd.f32 %v2209_v2, %v2195_v63 }
0x2d90   :  { %v2218_v8 = vmul.f32 %v2928_v7, %v2211_v6 }
0x2d92   :  { %2231 = vrot.lane.b32.xlu0 %v2218_v8, %s3009_s3 }
0x2e04   :  { %v2232_v3 = vpop.permute.xlu0 %2231 }
0x2e05   :  { %2658 = vmatmul.mubr.msk.f32.vlgmr.msra.gmra.mrb[18].mxu0 %vm167_vm4, %v2232_v3 }
0x2ed8   :  { %v2301_v29 = vpop.f32.mrb[18].mxu0 }
0x2ed9   :  { %v2302_v11 = vadd.f32 %v2361_v50, %v2301_v29  ;;  %v2659_v59 = vpop.f32.mrb[19].mxu0 }
0x2edb   :  { %2306 = vst.msk [vmem:[#allocation9] sm:$0x3] %vm2305_vm8, %v2302_v11 }
0x2edc   :  { %2984 = shalt.err (!%p2981_p6)
}
0x2edd   :  { %s2985_s16 = scalar_lea.hbm %s3483_s11, 32 }
0x2ede   :  { %p2986_p7 = scmp.ne.s32.totalorder %s3483_s11, %s2985_s16  ;;  %p2989_p8 = scmp.lt.u32.totalorder %s2985_s16, %s3483_s11 }
0x2ee0   :  { %p2991_p9 = pnand %p2989_p8, %p2986_p7 }
0x2ee2   :  { %2994 = shalt.err (!%p2991_p9)
}
0x2ee3   :  { %2316 = dma.vmem_to_hbm [thread:$0]  %s2314_s0, 32, %s3483_s11, [#allocation6]  }
0x2ee4   :  { %2999 = dma.done.wait [#allocation6], 32  }
0x2ee5   :  { %3000 = vsyncadd [#allocation6], 4294967264 }
0x2ee6   :  { %2320 = vsyncpa [#allocation5], 1 }
0x2ee7   :  { %2321 = vsyncpa [#allocation8], 1 }
0x2ee8   :  { %2322 = vsyncpa [#allocation6], 1 }

</bundles_post_ra>
